<compile_context>
chip_gen: v5e
topology: v5e:2x2
jax: 0.10.0
libtpu: 0.0.40
codegen_flags: <defaults>
</compile_context>

<pallas_src>
import numpy as np
import jax
import jax.numpy as jnp
from jax.experimental import pallas as pl
from jax.experimental.pallas import tpu as pltpu

# ----------------------------- hyperparameters ------------------------------
ACTION_EMB_IN, ACTION_EMB_OUT = 5, 8
ZONE_EMB_IN, ZONE_EMB_OUT = 20, 8
OTHER_LIN_IN, OTHER_LIN_OUT = 2, 16
D_MODEL = ACTION_EMB_OUT + ZONE_EMB_OUT + OTHER_LIN_OUT        # input_features_len = 32
NHEAD = 4
HEAD_DIM = D_MODEL // NHEAD
HIDDEN_DIM = 64
B, S = 2, 8
LN_EPS = 1e-5
F1 = D_MODEL + 1          # 33  (deltaT | x_relu)
F2 = D_MODEL + 1 + 20     # 53  (zone | deltaT | x_relu)
OUT_DIM = 1 + 20 + 5      # 26

# --------------------------- packed parameter slabs ---------------------------
# Weight slab: each weight occupies an 8-row-aligned row band, columns 0:N.
_W_DEFS = [
    ("w_qkv", D_MODEL, 3 * D_MODEL), ("w_out", D_MODEL, D_MODEL),
    ("w_ff1", D_MODEL, HIDDEN_DIM), ("w_ff2", HIDDEN_DIM, D_MODEL),
    ("w_relu", D_MODEL, D_MODEL), ("w_dt0", D_MODEL, D_MODEL),
    ("w_dt", D_MODEL, 1), ("w_z0", F1, F1), ("w_z", F1, 20),
    ("w_a0", F2, F2), ("w_a1", F2, F2), ("w_a", F2, 5),
]
W_LAYOUT = {}
_off = 0
for _name, _k, _n in _W_DEFS:
    W_LAYOUT[_name] = (_off, _k, _n)
    _off += -(-_k // 8) * 8                                    # round rows up to 8
W_SLAB_ROWS = _off                                             # 504
SLAB_COLS = 3 * D_MODEL                                        # 96

# Bias/LayerNorm slab: one row per vector, columns 0:N.
_B_DEFS = [
    ("b_qkv", 3 * D_MODEL), ("b_out", D_MODEL), ("g1", D_MODEL), ("be1", D_MODEL),
    ("b_ff1", HIDDEN_DIM), ("b_ff2", D_MODEL), ("g2", D_MODEL), ("be2", D_MODEL),
    ("b_relu", D_MODEL), ("b_dt0", D_MODEL), ("b_dt", 1), ("b_z0", F1),
    ("b_z", 20), ("b_a0", F2), ("b_a1", F2), ("b_a", 5),
]
B_LAYOUT = {name: (i, n) for i, (name, n) in enumerate(_B_DEFS)}
B_SLAB_ROWS = len(_B_DEFS)                                     # 16


def _layer_norm(y, g, b):
    mu = jnp.mean(y, axis=-1, keepdims=True)
    var = jnp.mean((y - mu) ** 2, axis=-1, keepdims=True)
    return (y - mu) * jax.lax.rsqrt(var + LN_EPS) * g + b


# --------------------------- fused forward kernel ----------------------------
# encoder layer (post-norm, relu FFN) + last-row select + prediction-head MLPs.
def nmstpp_kernel(src_ref, w_ref, b_ref, out_ref, qkv_sc, ctx_sc):
    def W(name):                           # static ref view -> single VMEM load
        off, k, n = W_LAYOUT[name]
        return w_ref[off:off + k, 0:n]

    def Bv(name):                          # (1, N) row, broadcasts over rows
        row, n = B_LAYOUT[name]
        return b_ref[row:row + 1, 0:n]

    def lin(val, wname, bname):
        return jnp.dot(val, W(wname), preferred_element_type=jnp.float32) + Bv(bname)

    x = src_ref[...]                                           # (B*S, D)

    # ---- multi-head self-attention ----
    qkv_sc[...] = lin(x, "w_qkv", "b_qkv")                     # one (16,32)@(32,96) matmul
    scale = 1.0 / float(np.sqrt(HEAD_DIM))
    for b in range(B):                                         # static: B*NHEAD = 8 iters
        r0 = b * S
        for h in range(NHEAD):
            c0 = h * HEAD_DIM
            q = qkv_sc[r0:r0 + S, c0:c0 + HEAD_DIM] * scale    # ref loads, not vreg slices
            k = qkv_sc[r0:r0 + S, D_MODEL + c0:D_MODEL + c0 + HEAD_DIM]
            v = qkv_sc[r0:r0 + S, 2 * D_MODEL + c0:2 * D_MODEL + c0 + HEAD_DIM]
            s = jax.lax.dot_general(q, k, (((1,), (1,)), ((), ())),
                                    preferred_element_type=jnp.float32)   # (S, S)
            s = s - jnp.max(s, axis=-1, keepdims=True)
            p = jnp.exp(s)
            p = p / jnp.sum(p, axis=-1, keepdims=True)
            # per-head context lands in its lane block of the concat buffer
            ctx_sc[r0:r0 + S, c0:c0 + HEAD_DIM] = jnp.dot(
                p, v, preferred_element_type=jnp.float32)
    attn = lin(ctx_sc[...], "w_out", "b_out")                  # single out-proj matmul

    y1 = _layer_norm(x + attn, Bv("g1"), Bv("be1"))
    ff = jnp.maximum(lin(y1, "w_ff1", "b_ff1"), 0.0)
    ff = lin(ff, "w_ff2", "b_ff2")
    y2 = _layer_norm(y1 + ff, Bv("g2"), Bv("be2"))             # (B*S, D)

    # ---- last-timestep selection (in-kernel, via one-hot selector matmul) ----
    col = jax.lax.broadcasted_iota(jnp.int32, (B, B * S), 1)
    row = jax.lax.broadcasted_iota(jnp.int32, (B, B * S), 0)
    sel = (col == row * S + (S - 1)).astype(jnp.float32)       # (B, B*S)
    x_last = jnp.dot(sel, y2, preferred_element_type=jnp.float32)   # (B, D)

    # ---- prediction heads ----
    x_relu = lin(x_last, "w_relu", "b_relu")   # no ReLU (faithful to original forward)

    dt = lin(x_relu, "w_dt0", "b_dt0")                         # NN_deltaT[0]
    dt = lin(dt, "w_dt", "b_dt")                               # lin_deltaT -> (B, 1)

    # features_zone = cat([dt, x_relu]) ; NN_zone[0] ; lin_zone
    oz, _, nz = W_LAYOUT["w_z0"]
    z = (dt * w_ref[oz:oz + 1, 0:nz]
         + jnp.dot(x_relu, w_ref[oz + 1:oz + F1, 0:nz],
                   preferred_element_type=jnp.float32)
         + Bv("b_z0"))
    z = lin(z, "w_z", "b_z")                                   # (B, 20)

    # features_action = cat([z, dt, x_relu]) ; NN_action[0..1] ; lin_action
    oa, _, na = W_LAYOUT["w_a0"]
    a = (jnp.dot(z, w_ref[oa:oa + 20, 0:na], preferred_element_type=jnp.float32)
         + dt * w_ref[oa + 20:oa + 21, 0:na]
         + jnp.dot(x_relu, w_ref[oa + 21:oa + F2, 0:na],
                   preferred_element_type=jnp.float32)
         + Bv("b_a0"))
    a = lin(a, "w_a1", "b_a1")
    a = lin(a, "w_a", "b_a")                                   # (B, 5)

    # single packed (B, 26) output -> one output DMA, no wrapper-side concat
    out_ref[:, 0:1] = dt
    out_ref[:, 1:21] = z
    out_ref[:, 21:26] = a


# --------------------------------- wrapper -----------------------------------
@jax.jit
def nmstpp_forward(X, p):
    # glue: embeddings, lin0, concat, positional encoding (XLA, fused under jit)
    feed_action = X[:, :, 0].astype(jnp.int32)
    feed_zone = X[:, :, 1].astype(jnp.int32)
    feed_other = X[:, :, 2:].astype(jnp.float32)
    x_act = jnp.take(p["emb_act"], feed_action, axis=0)
    x_zone = jnp.take(p["emb_zone"], feed_zone, axis=0)
    x_cont = feed_other @ p["w_lin0"] + p["b_lin0"]
    x_cat = jnp.concatenate([x_act, x_zone, x_cont], axis=2).astype(jnp.float32)

    # positional_encoding(X_cat): the original indexes shape[0] (=batch) as "pos"
    # and shape[1] (=seq) as "i", broadcasting over the feature dim -- reproduced.
    Bn, Sn, _ = x_cat.shape
    pos = np.arange(Bn, dtype=np.float64)[:, None]
    i = np.arange(Sn, dtype=np.float64)[None, :]
    ang = pos / np.power(100.0, 2.0 * i / Sn)
    pe = np.where((np.arange(Sn)[None, :] % 2) == 0, np.sin(ang), np.cos(ang))
    src = x_cat + jnp.asarray(pe, jnp.float32)[:, :, None]
    src2d = src.reshape(Bn * Sn, D_MODEL)

    vmem = pl.BlockSpec(memory_space=pltpu.MemorySpace.VMEM)
    out = pl.pallas_call(
        nmstpp_kernel,
        out_shape=jax.ShapeDtypeStruct((Bn, OUT_DIM), jnp.float32),
        in_specs=[vmem, vmem, vmem],
        out_specs=vmem,
        scratch_shapes=[pltpu.VMEM((Bn * Sn, 3 * D_MODEL), jnp.float32),  # qkv
                        pltpu.VMEM((Bn * Sn, D_MODEL), jnp.float32)],     # ctx (head concat)
    )(src2d, p["w_slab"], p["b_slab"])
    return out                                                  # (B, 26)


# --------------------------- deterministic params ----------------------------
def init_params(key):
    ks = jax.random.split(key, 28)
    rnd = lambda idx, shape, s=0.1: np.asarray(
        s * jax.random.normal(ks[idx], shape), np.float32)

    raw = dict(
        w_qkv=rnd(4, (D_MODEL, 3 * D_MODEL)), b_qkv=rnd(5, (3 * D_MODEL,)),
        w_out=rnd(6, (D_MODEL, D_MODEL)), b_out=rnd(7, (D_MODEL,)),
        g1=np.ones((D_MODEL,), np.float32), be1=np.zeros((D_MODEL,), np.float32),
        w_ff1=rnd(8, (D_MODEL, HIDDEN_DIM)), b_ff1=rnd(9, (HIDDEN_DIM,)),
        w_ff2=rnd(10, (HIDDEN_DIM, D_MODEL)), b_ff2=rnd(11, (D_MODEL,)),
        g2=np.ones((D_MODEL,), np.float32), be2=np.zeros((D_MODEL,), np.float32),
        w_relu=rnd(12, (D_MODEL, D_MODEL)), b_relu=rnd(13, (D_MODEL,)),
        w_dt0=rnd(14, (D_MODEL, D_MODEL)), b_dt0=rnd(15, (D_MODEL,)),
        w_dt=rnd(16, (D_MODEL, 1)), b_dt=rnd(17, (1,)),
        w_z0=rnd(18, (F1, F1)), b_z0=rnd(19, (F1,)),
        w_z=rnd(20, (F1, 20)), b_z=rnd(21, (20,)),
        w_a0=rnd(22, (F2, F2)), b_a0=rnd(23, (F2,)),
        w_a1=rnd(24, (F2, F2)), b_a1=rnd(25, (F2,)),
        w_a=rnd(26, (F2, 5)), b_a=rnd(27, (5,)),
    )

    # pack into two contiguous slabs (done once, at init)
    w_slab = np.zeros((W_SLAB_ROWS, SLAB_COLS), np.float32)
    for name, (off, k, n) in W_LAYOUT.items():
        w_slab[off:off + k, :n] = raw[name]
    b_slab = np.zeros((B_SLAB_ROWS, SLAB_COLS), np.float32)
    for name, (row, n) in B_LAYOUT.items():
        b_slab[row, :n] = raw[name]

    return dict(
        emb_act=jnp.asarray(rnd(0, (ACTION_EMB_IN, ACTION_EMB_OUT))),
        emb_zone=jnp.asarray(rnd(1, (ZONE_EMB_IN, ZONE_EMB_OUT))),
        w_lin0=jnp.asarray(rnd(2, (OTHER_LIN_IN, OTHER_LIN_OUT))),
        b_lin0=jnp.asarray(rnd(3, (OTHER_LIN_OUT,))),
        w_slab=jnp.asarray(w_slab),
        b_slab=jnp.asarray(b_slab),
    )


if __name__ == "__main__":
    key = jax.random.PRNGKey(0)
    kp, ka, kz, ko = jax.random.split(key, 4)
    params = init_params(kp)

    actions = jax.random.randint(ka, (B, S), 0, ACTION_EMB_IN).astype(jnp.float32)
    zones = jax.random.randint(kz, (B, S), 0, ZONE_EMB_IN).astype(jnp.float32)
    others = jax.random.normal(ko, (B, S, OTHER_LIN_IN), jnp.float32)
    X = jnp.concatenate([actions[..., None], zones[..., None], others], axis=-1)  # (B,S,4)

    out = jax.block_until_ready(nmstpp_forward(X, params))
    assert out.shape == (B, OUT_DIM) and out.dtype == jnp.float32
    print("KERNEL_OK")
</pallas_src>

<mosaic_0001>
module attributes {stable_mosaic.version = 11 : i64} {
  func.func @nmstpp_kernel(%arg0: memref<16x32xf32, #tpu.memory_space<vmem>>, %arg1: memref<504x96xf32, #tpu.memory_space<vmem>>, %arg2: memref<16x96xf32, #tpu.memory_space<vmem>>, %arg3: memref<2x26xf32, #tpu.memory_space<vmem>>, %arg4: memref<16x96xf32, #tpu.memory_space<vmem>>, %arg5: memref<16x32xf32, #tpu.memory_space<vmem>>) attributes {dimension_semantics = [], scalar_prefetch = 0 : i64, scratch_operands = 2 : i64, tpu.core_type = #tpu.core_type<tc>} {
    %c0 = arith.constant 0 : index
    %c0_0 = arith.constant 0 : index
    %0 = vector.load %arg0[%c0, %c0_0] : memref<16x32xf32, #tpu.memory_space<vmem>>, vector<16x32xf32>
    %c0_1 = arith.constant 0 : index
    %c0_2 = arith.constant 0 : index
    %1 = vector.load %arg1[%c0_1, %c0_2] : memref<504x96xf32, #tpu.memory_space<vmem>>, vector<32x96xf32>
    %cst = arith.constant dense<0.000000e+00> : vector<16x96xf32>
    %2 = tpu.matmul %0, %1, %cst {dimension_numbers = #tpu.dot_dimension_numbers<[1], [0], [0], [1], [0, 0, 1, 1], [], []>} : vector<16x32xf32>, vector<32x96xf32>, vector<16x96xf32> -> vector<16x96xf32>
    %c0_3 = arith.constant 0 : index
    %c0_4 = arith.constant 0 : index
    %3 = vector.load %arg2[%c0_3, %c0_4] : memref<16x96xf32, #tpu.memory_space<vmem>>, vector<1x96xf32>
    %4 = vector.broadcast %3 : vector<1x96xf32> to vector<16x96xf32>
    %5 = arith.addf %2, %4 : vector<16x96xf32>
    %c0_5 = arith.constant 0 : index
    %c0_6 = arith.constant 0 : index
    %6 = vector.load %arg4[%c0_5, %c0_6] : memref<16x96xf32, #tpu.memory_space<vmem>>, vector<16x96xf32>
    tpu.vector_store %arg4[%c0_5, %c0_6], %5 {strides = array<i32>} : memref<16x96xf32, #tpu.memory_space<vmem>>, vector<16x96xf32>,
    %c0_7 = arith.constant 0 : index
    %c0_8 = arith.constant 0 : index
    %7 = vector.load %arg4[%c0_7, %c0_8] : memref<16x96xf32, #tpu.memory_space<vmem>>, vector<8x8xf32>
    %cst_9 = arith.constant 0.353553385 : f32
    %8 = vector.broadcast %cst_9 : f32 to vector<8x8xf32>
    %9 = arith.mulf %7, %8 : vector<8x8xf32>
    %c0_10 = arith.constant 0 : index
    %c32 = arith.constant 32 : index
    %10 = vector.load %arg4[%c0_10, %c32] : memref<16x96xf32, #tpu.memory_space<vmem>>, vector<8x8xf32>
    %c0_11 = arith.constant 0 : index
    %c64 = arith.constant 64 : index
    %11 = vector.load %arg4[%c0_11, %c64] : memref<16x96xf32, #tpu.memory_space<vmem>>, vector<8x8xf32>
    %cst_12 = arith.constant dense<0.000000e+00> : vector<8x8xf32>
    %12 = tpu.matmul %9, %10, %cst_12 {dimension_numbers = #tpu.dot_dimension_numbers<[1], [1], [0], [0], [0, 0, 1, 0], [], []>} : vector<8x8xf32>, vector<8x8xf32>, vector<8x8xf32> -> vector<8x8xf32>
    %cst_13 = arith.constant dense<0xFF800000> : vector<8xf32>
    %13 = vector.multi_reduction <maximumf>, %12, %cst_13 [1] : vector<8x8xf32> to vector<8xf32>
    %14 = vector.shape_cast %13 : vector<8xf32> to vector<8x1xf32>
    %15 = vector.broadcast %14 : vector<8x1xf32> to vector<8x8xf32>
    %16 = arith.subf %12, %15 : vector<8x8xf32>
    %17 = math.exp %16 : vector<8x8xf32>
    %cst_14 = arith.constant dense<0.000000e+00> : vector<8xf32>
    %18 = vector.multi_reduction <add>, %17, %cst_14 [1] : vector<8x8xf32> to vector<8xf32>
    %19 = vector.shape_cast %18 : vector<8xf32> to vector<8x1xf32>
    %20 = vector.broadcast %19 : vector<8x1xf32> to vector<8x8xf32>
    %21 = arith.divf %17, %20 : vector<8x8xf32>
    %cst_15 = arith.constant dense<0.000000e+00> : vector<8x8xf32>
    %22 = tpu.matmul %21, %11, %cst_15 {dimension_numbers = #tpu.dot_dimension_numbers<[1], [0], [0], [1], [0, 0, 1, 1], [], []>} : vector<8x8xf32>, vector<8x8xf32>, vector<8x8xf32> -> vector<8x8xf32>
    %c0_16 = arith.constant 0 : index
    %c0_17 = arith.constant 0 : index
    %23 = vector.load %arg5[%c0_16, %c0_17] : memref<16x32xf32, #tpu.memory_space<vmem>>, vector<8x8xf32>
    tpu.vector_store %arg5[%c0_16, %c0_17], %22 {strides = array<i32>} : memref<16x32xf32, #tpu.memory_space<vmem>>, vector<8x8xf32>,
    %c0_18 = arith.constant 0 : index
    %c8 = arith.constant 8 : index
    %24 = vector.load %arg4[%c0_18, %c8] : memref<16x96xf32, #tpu.memory_space<vmem>>, vector<8x8xf32>
    %cst_19 = arith.constant 0.353553385 : f32
    %25 = vector.broadcast %cst_19 : f32 to vector<8x8xf32>
    %26 = arith.mulf %24, %25 : vector<8x8xf32>
    %c0_20 = arith.constant 0 : index
    %c40 = arith.constant 40 : index
    %27 = vector.load %arg4[%c0_20, %c40] : memref<16x96xf32, #tpu.memory_space<vmem>>, vector<8x8xf32>
    %c0_21 = arith.constant 0 : index
    %c72 = arith.constant 72 : index
    %28 = vector.load %arg4[%c0_21, %c72] : memref<16x96xf32, #tpu.memory_space<vmem>>, vector<8x8xf32>
    %cst_22 = arith.constant dense<0.000000e+00> : vector<8x8xf32>
    %29 = tpu.matmul %26, %27, %cst_22 {dimension_numbers = #tpu.dot_dimension_numbers<[1], [1], [0], [0], [0, 0, 1, 0], [], []>} : vector<8x8xf32>, vector<8x8xf32>, vector<8x8xf32> -> vector<8x8xf32>
    %cst_23 = arith.constant dense<0xFF800000> : vector<8xf32>
    %30 = vector.multi_reduction <maximumf>, %29, %cst_23 [1] : vector<8x8xf32> to vector<8xf32>
    %31 = vector.shape_cast %30 : vector<8xf32> to vector<8x1xf32>
    %32 = vector.broadcast %31 : vector<8x1xf32> to vector<8x8xf32>
    %33 = arith.subf %29, %32 : vector<8x8xf32>
    %34 = math.exp %33 : vector<8x8xf32>
    %cst_24 = arith.constant dense<0.000000e+00> : vector<8xf32>
    %35 = vector.multi_reduction <add>, %34, %cst_24 [1] : vector<8x8xf32> to vector<8xf32>
    %36 = vector.shape_cast %35 : vector<8xf32> to vector<8x1xf32>
    %37 = vector.broadcast %36 : vector<8x1xf32> to vector<8x8xf32>
    %38 = arith.divf %34, %37 : vector<8x8xf32>
    %cst_25 = arith.constant dense<0.000000e+00> : vector<8x8xf32>
    %39 = tpu.matmul %38, %28, %cst_25 {dimension_numbers = #tpu.dot_dimension_numbers<[1], [0], [0], [1], [0, 0, 1, 1], [], []>} : vector<8x8xf32>, vector<8x8xf32>, vector<8x8xf32> -> vector<8x8xf32>
    %c0_26 = arith.constant 0 : index
    %c8_27 = arith.constant 8 : index
    %40 = vector.load %arg5[%c0_26, %c8_27] : memref<16x32xf32, #tpu.memory_space<vmem>>, vector<8x8xf32>
    tpu.vector_store %arg5[%c0_26, %c8_27], %39 {strides = array<i32>} : memref<16x32xf32, #tpu.memory_space<vmem>>, vector<8x8xf32>,
    %c0_28 = arith.constant 0 : index
    %c16 = arith.constant 16 : index
    %41 = vector.load %arg4[%c0_28, %c16] : memref<16x96xf32, #tpu.memory_space<vmem>>, vector<8x8xf32>
    %cst_29 = arith.constant 0.353553385 : f32
    %42 = vector.broadcast %cst_29 : f32 to vector<8x8xf32>
    %43 = arith.mulf %41, %42 : vector<8x8xf32>
    %c0_30 = arith.constant 0 : index
    %c48 = arith.constant 48 : index
    %44 = vector.load %arg4[%c0_30, %c48] : memref<16x96xf32, #tpu.memory_space<vmem>>, vector<8x8xf32>
    %c0_31 = arith.constant 0 : index
    %c80 = arith.constant 80 : index
    %45 = vector.load %arg4[%c0_31, %c80] : memref<16x96xf32, #tpu.memory_space<vmem>>, vector<8x8xf32>
    %cst_32 = arith.constant dense<0.000000e+00> : vector<8x8xf32>
    %46 = tpu.matmul %43, %44, %cst_32 {dimension_numbers = #tpu.dot_dimension_numbers<[1], [1], [0], [0], [0, 0, 1, 0], [], []>} : vector<8x8xf32>, vector<8x8xf32>, vector<8x8xf32> -> vector<8x8xf32>
    %cst_33 = arith.constant dense<0xFF800000> : vector<8xf32>
    %47 = vector.multi_reduction <maximumf>, %46, %cst_33 [1] : vector<8x8xf32> to vector<8xf32>
    %48 = vector.shape_cast %47 : vector<8xf32> to vector<8x1xf32>
    %49 = vector.broadcast %48 : vector<8x1xf32> to vector<8x8xf32>
    %50 = arith.subf %46, %49 : vector<8x8xf32>
    %51 = math.exp %50 : vector<8x8xf32>
    %cst_34 = arith.constant dense<0.000000e+00> : vector<8xf32>
    %52 = vector.multi_reduction <add>, %51, %cst_34 [1] : vector<8x8xf32> to vector<8xf32>
    %53 = vector.shape_cast %52 : vector<8xf32> to vector<8x1xf32>
    %54 = vector.broadcast %53 : vector<8x1xf32> to vector<8x8xf32>
    %55 = arith.divf %51, %54 : vector<8x8xf32>
    %cst_35 = arith.constant dense<0.000000e+00> : vector<8x8xf32>
    %56 = tpu.matmul %55, %45, %cst_35 {dimension_numbers = #tpu.dot_dimension_numbers<[1], [0], [0], [1], [0, 0, 1, 1], [], []>} : vector<8x8xf32>, vector<8x8xf32>, vector<8x8xf32> -> vector<8x8xf32>
    %c0_36 = arith.constant 0 : index
    %c16_37 = arith.constant 16 : index
    %57 = vector.load %arg5[%c0_36, %c16_37] : memref<16x32xf32, #tpu.memory_space<vmem>>, vector<8x8xf32>
    tpu.vector_store %arg5[%c0_36, %c16_37], %56 {strides = array<i32>} : memref<16x32xf32, #tpu.memory_space<vmem>>, vector<8x8xf32>,
    %c0_38 = arith.constant 0 : index
    %c24 = arith.constant 24 : index
    %58 = vector.load %arg4[%c0_38, %c24] : memref<16x96xf32, #tpu.memory_space<vmem>>, vector<8x8xf32>
    %cst_39 = arith.constant 0.353553385 : f32
    %59 = vector.broadcast %cst_39 : f32 to vector<8x8xf32>
    %60 = arith.mulf %58, %59 : vector<8x8xf32>
    %c0_40 = arith.constant 0 : index
    %c56 = arith.constant 56 : index
    %61 = vector.load %arg4[%c0_40, %c56] : memref<16x96xf32, #tpu.memory_space<vmem>>, vector<8x8xf32>
    %c0_41 = arith.constant 0 : index
    %c88 = arith.constant 88 : index
    %62 = vector.load %arg4[%c0_41, %c88] : memref<16x96xf32, #tpu.memory_space<vmem>>, vector<8x8xf32>
    %cst_42 = arith.constant dense<0.000000e+00> : vector<8x8xf32>
    %63 = tpu.matmul %60, %61, %cst_42 {dimension_numbers = #tpu.dot_dimension_numbers<[1], [1], [0], [0], [0, 0, 1, 0], [], []>} : vector<8x8xf32>, vector<8x8xf32>, vector<8x8xf32> -> vector<8x8xf32>
    %cst_43 = arith.constant dense<0xFF800000> : vector<8xf32>
    %64 = vector.multi_reduction <maximumf>, %63, %cst_43 [1] : vector<8x8xf32> to vector<8xf32>
    %65 = vector.shape_cast %64 : vector<8xf32> to vector<8x1xf32>
    %66 = vector.broadcast %65 : vector<8x1xf32> to vector<8x8xf32>
    %67 = arith.subf %63, %66 : vector<8x8xf32>
    %68 = math.exp %67 : vector<8x8xf32>
    %cst_44 = arith.constant dense<0.000000e+00> : vector<8xf32>
    %69 = vector.multi_reduction <add>, %68, %cst_44 [1] : vector<8x8xf32> to vector<8xf32>
    %70 = vector.shape_cast %69 : vector<8xf32> to vector<8x1xf32>
    %71 = vector.broadcast %70 : vector<8x1xf32> to vector<8x8xf32>
    %72 = arith.divf %68, %71 : vector<8x8xf32>
    %cst_45 = arith.constant dense<0.000000e+00> : vector<8x8xf32>
    %73 = tpu.matmul %72, %62, %cst_45 {dimension_numbers = #tpu.dot_dimension_numbers<[1], [0], [0], [1], [0, 0, 1, 1], [], []>} : vector<8x8xf32>, vector<8x8xf32>, vector<8x8xf32> -> vector<8x8xf32>
    %c0_46 = arith.constant 0 : index
    %c24_47 = arith.constant 24 : index
    %74 = vector.load %arg5[%c0_46, %c24_47] : memref<16x32xf32, #tpu.memory_space<vmem>>, vector<8x8xf32>
    tpu.vector_store %arg5[%c0_46, %c24_47], %73 {strides = array<i32>} : memref<16x32xf32, #tpu.memory_space<vmem>>, vector<8x8xf32>,
    %c8_48 = arith.constant 8 : index
    %c0_49 = arith.constant 0 : index
    %75 = vector.load %arg4[%c8_48, %c0_49] : memref<16x96xf32, #tpu.memory_space<vmem>>, vector<8x8xf32>
    %cst_50 = arith.constant 0.353553385 : f32
    %76 = vector.broadcast %cst_50 : f32 to vector<8x8xf32>
    %77 = arith.mulf %75, %76 : vector<8x8xf32>
    %c8_51 = arith.constant 8 : index
    %c32_52 = arith.constant 32 : index
    %78 = vector.load %arg4[%c8_51, %c32_52] : memref<16x96xf32, #tpu.memory_space<vmem>>, vector<8x8xf32>
    %c8_53 = arith.constant 8 : index
    %c64_54 = arith.constant 64 : index
    %79 = vector.load %arg4[%c8_53, %c64_54] : memref<16x96xf32, #tpu.memory_space<vmem>>, vector<8x8xf32>
    %cst_55 = arith.constant dense<0.000000e+00> : vector<8x8xf32>
    %80 = tpu.matmul %77, %78, %cst_55 {dimension_numbers = #tpu.dot_dimension_numbers<[1], [1], [0], [0], [0, 0, 1, 0], [], []>} : vector<8x8xf32>, vector<8x8xf32>, vector<8x8xf32> -> vector<8x8xf32>
    %cst_56 = arith.constant dense<0xFF800000> : vector<8xf32>
    %81 = vector.multi_reduction <maximumf>, %80, %cst_56 [1] : vector<8x8xf32> to vector<8xf32>
    %82 = vector.shape_cast %81 : vector<8xf32> to vector<8x1xf32>
    %83 = vector.broadcast %82 : vector<8x1xf32> to vector<8x8xf32>
    %84 = arith.subf %80, %83 : vector<8x8xf32>
    %85 = math.exp %84 : vector<8x8xf32>
    %cst_57 = arith.constant dense<0.000000e+00> : vector<8xf32>
    %86 = vector.multi_reduction <add>, %85, %cst_57 [1] : vector<8x8xf32> to vector<8xf32>
    %87 = vector.shape_cast %86 : vector<8xf32> to vector<8x1xf32>
    %88 = vector.broadcast %87 : vector<8x1xf32> to vector<8x8xf32>
    %89 = arith.divf %85, %88 : vector<8x8xf32>
    %cst_58 = arith.constant dense<0.000000e+00> : vector<8x8xf32>
    %90 = tpu.matmul %89, %79, %cst_58 {dimension_numbers = #tpu.dot_dimension_numbers<[1], [0], [0], [1], [0, 0, 1, 1], [], []>} : vector<8x8xf32>, vector<8x8xf32>, vector<8x8xf32> -> vector<8x8xf32>
    %c8_59 = arith.constant 8 : index
    %c0_60 = arith.constant 0 : index
    %91 = vector.load %arg5[%c8_59, %c0_60] : memref<16x32xf32, #tpu.memory_space<vmem>>, vector<8x8xf32>
    tpu.vector_store %arg5[%c8_59, %c0_60], %90 {strides = array<i32>} : memref<16x32xf32, #tpu.memory_space<vmem>>, vector<8x8xf32>,
    %c8_61 = arith.constant 8 : index
    %c8_62 = arith.constant 8 : index
    %92 = vector.load %arg4[%c8_61, %c8_62] : memref<16x96xf32, #tpu.memory_space<vmem>>, vector<8x8xf32>
    %cst_63 = arith.constant 0.353553385 : f32
    %93 = vector.broadcast %cst_63 : f32 to vector<8x8xf32>
    %94 = arith.mulf %92, %93 : vector<8x8xf32>
    %c8_64 = arith.constant 8 : index
    %c40_65 = arith.constant 40 : index
    %95 = vector.load %arg4[%c8_64, %c40_65] : memref<16x96xf32, #tpu.memory_space<vmem>>, vector<8x8xf32>
    %c8_66 = arith.constant 8 : index
    %c72_67 = arith.constant 72 : index
    %96 = vector.load %arg4[%c8_66, %c72_67] : memref<16x96xf32, #tpu.memory_space<vmem>>, vector<8x8xf32>
    %cst_68 = arith.constant dense<0.000000e+00> : vector<8x8xf32>
    %97 = tpu.matmul %94, %95, %cst_68 {dimension_numbers = #tpu.dot_dimension_numbers<[1], [1], [0], [0], [0, 0, 1, 0], [], []>} : vector<8x8xf32>, vector<8x8xf32>, vector<8x8xf32> -> vector<8x8xf32>
    %cst_69 = arith.constant dense<0xFF800000> : vector<8xf32>
    %98 = vector.multi_reduction <maximumf>, %97, %cst_69 [1] : vector<8x8xf32> to vector<8xf32>
    %99 = vector.shape_cast %98 : vector<8xf32> to vector<8x1xf32>
    %100 = vector.broadcast %99 : vector<8x1xf32> to vector<8x8xf32>
    %101 = arith.subf %97, %100 : vector<8x8xf32>
    %102 = math.exp %101 : vector<8x8xf32>
    %cst_70 = arith.constant dense<0.000000e+00> : vector<8xf32>
    %103 = vector.multi_reduction <add>, %102, %cst_70 [1] : vector<8x8xf32> to vector<8xf32>
    %104 = vector.shape_cast %103 : vector<8xf32> to vector<8x1xf32>
    %105 = vector.broadcast %104 : vector<8x1xf32> to vector<8x8xf32>
    %106 = arith.divf %102, %105 : vector<8x8xf32>
    %cst_71 = arith.constant dense<0.000000e+00> : vector<8x8xf32>
    %107 = tpu.matmul %106, %96, %cst_71 {dimension_numbers = #tpu.dot_dimension_numbers<[1], [0], [0], [1], [0, 0, 1, 1], [], []>} : vector<8x8xf32>, vector<8x8xf32>, vector<8x8xf32> -> vector<8x8xf32>
    %c8_72 = arith.constant 8 : index
    %c8_73 = arith.constant 8 : index
    %108 = vector.load %arg5[%c8_72, %c8_73] : memref<16x32xf32, #tpu.memory_space<vmem>>, vector<8x8xf32>
    tpu.vector_store %arg5[%c8_72, %c8_73], %107 {strides = array<i32>} : memref<16x32xf32, #tpu.memory_space<vmem>>, vector<8x8xf32>,
    %c8_74 = arith.constant 8 : index
    %c16_75 = arith.constant 16 : index
    %109 = vector.load %arg4[%c8_74, %c16_75] : memref<16x96xf32, #tpu.memory_space<vmem>>, vector<8x8xf32>
    %cst_76 = arith.constant 0.353553385 : f32
    %110 = vector.broadcast %cst_76 : f32 to vector<8x8xf32>
    %111 = arith.mulf %109, %110 : vector<8x8xf32>
    %c8_77 = arith.constant 8 : index
    %c48_78 = arith.constant 48 : index
    %112 = vector.load %arg4[%c8_77, %c48_78] : memref<16x96xf32, #tpu.memory_space<vmem>>, vector<8x8xf32>
    %c8_79 = arith.constant 8 : index
    %c80_80 = arith.constant 80 : index
    %113 = vector.load %arg4[%c8_79, %c80_80] : memref<16x96xf32, #tpu.memory_space<vmem>>, vector<8x8xf32>
    %cst_81 = arith.constant dense<0.000000e+00> : vector<8x8xf32>
    %114 = tpu.matmul %111, %112, %cst_81 {dimension_numbers = #tpu.dot_dimension_numbers<[1], [1], [0], [0], [0, 0, 1, 0], [], []>} : vector<8x8xf32>, vector<8x8xf32>, vector<8x8xf32> -> vector<8x8xf32>
    %cst_82 = arith.constant dense<0xFF800000> : vector<8xf32>
    %115 = vector.multi_reduction <maximumf>, %114, %cst_82 [1] : vector<8x8xf32> to vector<8xf32>
    %116 = vector.shape_cast %115 : vector<8xf32> to vector<8x1xf32>
    %117 = vector.broadcast %116 : vector<8x1xf32> to vector<8x8xf32>
    %118 = arith.subf %114, %117 : vector<8x8xf32>
    %119 = math.exp %118 : vector<8x8xf32>
    %cst_83 = arith.constant dense<0.000000e+00> : vector<8xf32>
    %120 = vector.multi_reduction <add>, %119, %cst_83 [1] : vector<8x8xf32> to vector<8xf32>
    %121 = vector.shape_cast %120 : vector<8xf32> to vector<8x1xf32>
    %122 = vector.broadcast %121 : vector<8x1xf32> to vector<8x8xf32>
    %123 = arith.divf %119, %122 : vector<8x8xf32>
    %cst_84 = arith.constant dense<0.000000e+00> : vector<8x8xf32>
    %124 = tpu.matmul %123, %113, %cst_84 {dimension_numbers = #tpu.dot_dimension_numbers<[1], [0], [0], [1], [0, 0, 1, 1], [], []>} : vector<8x8xf32>, vector<8x8xf32>, vector<8x8xf32> -> vector<8x8xf32>
    %c8_85 = arith.constant 8 : index
    %c16_86 = arith.constant 16 : index
    %125 = vector.load %arg5[%c8_85, %c16_86] : memref<16x32xf32, #tpu.memory_space<vmem>>, vector<8x8xf32>
    tpu.vector_store %arg5[%c8_85, %c16_86], %124 {strides = array<i32>} : memref<16x32xf32, #tpu.memory_space<vmem>>, vector<8x8xf32>,
    %c8_87 = arith.constant 8 : index
    %c24_88 = arith.constant 24 : index
    %126 = vector.load %arg4[%c8_87, %c24_88] : memref<16x96xf32, #tpu.memory_space<vmem>>, vector<8x8xf32>
    %cst_89 = arith.constant 0.353553385 : f32
    %127 = vector.broadcast %cst_89 : f32 to vector<8x8xf32>
    %128 = arith.mulf %126, %127 : vector<8x8xf32>
    %c8_90 = arith.constant 8 : index
    %c56_91 = arith.constant 56 : index
    %129 = vector.load %arg4[%c8_90, %c56_91] : memref<16x96xf32, #tpu.memory_space<vmem>>, vector<8x8xf32>
    %c8_92 = arith.constant 8 : index
    %c88_93 = arith.constant 88 : index
    %130 = vector.load %arg4[%c8_92, %c88_93] : memref<16x96xf32, #tpu.memory_space<vmem>>, vector<8x8xf32>
    %cst_94 = arith.constant dense<0.000000e+00> : vector<8x8xf32>
    %131 = tpu.matmul %128, %129, %cst_94 {dimension_numbers = #tpu.dot_dimension_numbers<[1], [1], [0], [0], [0, 0, 1, 0], [], []>} : vector<8x8xf32>, vector<8x8xf32>, vector<8x8xf32> -> vector<8x8xf32>
    %cst_95 = arith.constant dense<0xFF800000> : vector<8xf32>
    %132 = vector.multi_reduction <maximumf>, %131, %cst_95 [1] : vector<8x8xf32> to vector<8xf32>
    %133 = vector.shape_cast %132 : vector<8xf32> to vector<8x1xf32>
    %134 = vector.broadcast %133 : vector<8x1xf32> to vector<8x8xf32>
    %135 = arith.subf %131, %134 : vector<8x8xf32>
    %136 = math.exp %135 : vector<8x8xf32>
    %cst_96 = arith.constant dense<0.000000e+00> : vector<8xf32>
    %137 = vector.multi_reduction <add>, %136, %cst_96 [1] : vector<8x8xf32> to vector<8xf32>
    %138 = vector.shape_cast %137 : vector<8xf32> to vector<8x1xf32>
    %139 = vector.broadcast %138 : vector<8x1xf32> to vector<8x8xf32>
    %140 = arith.divf %136, %139 : vector<8x8xf32>
    %cst_97 = arith.constant dense<0.000000e+00> : vector<8x8xf32>
    %141 = tpu.matmul %140, %130, %cst_97 {dimension_numbers = #tpu.dot_dimension_numbers<[1], [0], [0], [1], [0, 0, 1, 1], [], []>} : vector<8x8xf32>, vector<8x8xf32>, vector<8x8xf32> -> vector<8x8xf32>
    %c8_98 = arith.constant 8 : index
    %c24_99 = arith.constant 24 : index
    %142 = vector.load %arg5[%c8_98, %c24_99] : memref<16x32xf32, #tpu.memory_space<vmem>>, vector<8x8xf32>
    tpu.vector_store %arg5[%c8_98, %c24_99], %141 {strides = array<i32>} : memref<16x32xf32, #tpu.memory_space<vmem>>, vector<8x8xf32>,
    %c0_100 = arith.constant 0 : index
    %c0_101 = arith.constant 0 : index
    %143 = vector.load %arg5[%c0_100, %c0_101] : memref<16x32xf32, #tpu.memory_space<vmem>>, vector<16x32xf32>
    %c32_102 = arith.constant 32 : index
    %c0_103 = arith.constant 0 : index
    %144 = vector.load %arg1[%c32_102, %c0_103] : memref<504x96xf32, #tpu.memory_space<vmem>>, vector<32x32xf32>
    %cst_104 = arith.constant dense<0.000000e+00> : vector<16x32xf32>
    %145 = tpu.matmul %143, %144, %cst_104 {dimension_numbers = #tpu.dot_dimension_numbers<[1], [0], [0], [1], [0, 0, 1, 1], [], []>} : vector<16x32xf32>, vector<32x32xf32>, vector<16x32xf32> -> vector<16x32xf32>
    %c1 = arith.constant 1 : index
    %c0_105 = arith.constant 0 : index
    %146 = vector.load %arg2[%c1, %c0_105] : memref<16x96xf32, #tpu.memory_space<vmem>>, vector<1x32xf32>
    %147 = vector.broadcast %146 : vector<1x32xf32> to vector<16x32xf32>
    %148 = arith.addf %145, %147 : vector<16x32xf32>
    %149 = arith.addf %0, %148 : vector<16x32xf32>
    %c2 = arith.constant 2 : index
    %c0_106 = arith.constant 0 : index
    %150 = vector.load %arg2[%c2, %c0_106] : memref<16x96xf32, #tpu.memory_space<vmem>>, vector<1x32xf32>
    %c3 = arith.constant 3 : index
    %c0_107 = arith.constant 0 : index
    %151 = vector.load %arg2[%c3, %c0_107] : memref<16x96xf32, #tpu.memory_space<vmem>>, vector<1x32xf32>
    %cst_108 = arith.constant dense<0.000000e+00> : vector<16xf32>
    %152 = vector.multi_reduction <add>, %149, %cst_108 [1] : vector<16x32xf32> to vector<16xf32>
    %153 = vector.shape_cast %152 : vector<16xf32> to vector<16x1xf32>
    %cst_109 = arith.constant 3.200000e+01 : f32
    %154 = vector.broadcast %cst_109 : f32 to vector<16x1xf32>
    %155 = arith.divf %153, %154 : vector<16x1xf32>
    %156 = vector.broadcast %155 : vector<16x1xf32> to vector<16x32xf32>
    %157 = arith.subf %149, %156 : vector<16x32xf32>
    %158 = arith.mulf %157, %157 : vector<16x32xf32>
    %cst_110 = arith.constant dense<0.000000e+00> : vector<16xf32>
    %159 = vector.multi_reduction <add>, %158, %cst_110 [1] : vector<16x32xf32> to vector<16xf32>
    %160 = vector.shape_cast %159 : vector<16xf32> to vector<16x1xf32>
    %cst_111 = arith.constant 3.200000e+01 : f32
    %161 = vector.broadcast %cst_111 : f32 to vector<16x1xf32>
    %162 = arith.divf %160, %161 : vector<16x1xf32>
    %163 = vector.broadcast %155 : vector<16x1xf32> to vector<16x32xf32>
    %164 = arith.subf %149, %163 : vector<16x32xf32>
    %cst_112 = arith.constant 9.99999974E-6 : f32
    %165 = vector.broadcast %cst_112 : f32 to vector<16x1xf32>
    %166 = arith.addf %162, %165 : vector<16x1xf32>
    %167 = math.rsqrt %166 : vector<16x1xf32>
    %168 = vector.broadcast %167 : vector<16x1xf32> to vector<16x32xf32>
    %169 = arith.mulf %164, %168 : vector<16x32xf32>
    %170 = vector.broadcast %150 : vector<1x32xf32> to vector<16x32xf32>
    %171 = arith.mulf %169, %170 : vector<16x32xf32>
    %172 = vector.broadcast %151 : vector<1x32xf32> to vector<16x32xf32>
    %173 = arith.addf %171, %172 : vector<16x32xf32>
    %c64_113 = arith.constant 64 : index
    %c0_114 = arith.constant 0 : index
    %174 = vector.load %arg1[%c64_113, %c0_114] : memref<504x96xf32, #tpu.memory_space<vmem>>, vector<32x64xf32>
    %cst_115 = arith.constant dense<0.000000e+00> : vector<16x64xf32>
    %175 = tpu.matmul %173, %174, %cst_115 {dimension_numbers = #tpu.dot_dimension_numbers<[1], [0], [0], [1], [0, 0, 1, 1], [], []>} : vector<16x32xf32>, vector<32x64xf32>, vector<16x64xf32> -> vector<16x64xf32>
    %c4 = arith.constant 4 : index
    %c0_116 = arith.constant 0 : index
    %176 = vector.load %arg2[%c4, %c0_116] : memref<16x96xf32, #tpu.memory_space<vmem>>, vector<1x64xf32>
    %177 = vector.broadcast %176 : vector<1x64xf32> to vector<16x64xf32>
    %178 = arith.addf %175, %177 : vector<16x64xf32>
    %cst_117 = arith.constant 0.000000e+00 : f32
    %179 = vector.broadcast %cst_117 : f32 to vector<16x64xf32>
    %180 = arith.maximumf %178, %179 : vector<16x64xf32>
    %c96 = arith.constant 96 : index
    %c0_118 = arith.constant 0 : index
    %181 = vector.load %arg1[%c96, %c0_118] : memref<504x96xf32, #tpu.memory_space<vmem>>, vector<64x32xf32>
    %cst_119 = arith.constant dense<0.000000e+00> : vector<16x32xf32>
    %182 = tpu.matmul %180, %181, %cst_119 {dimension_numbers = #tpu.dot_dimension_numbers<[1], [0], [0], [1], [0, 0, 1, 1], [], []>} : vector<16x64xf32>, vector<64x32xf32>, vector<16x32xf32> -> vector<16x32xf32>
    %c5 = arith.constant 5 : index
    %c0_120 = arith.constant 0 : index
    %183 = vector.load %arg2[%c5, %c0_120] : memref<16x96xf32, #tpu.memory_space<vmem>>, vector<1x32xf32>
    %184 = vector.broadcast %183 : vector<1x32xf32> to vector<16x32xf32>
    %185 = arith.addf %182, %184 : vector<16x32xf32>
    %186 = arith.addf %173, %185 : vector<16x32xf32>
    %c6 = arith.constant 6 : index
    %c0_121 = arith.constant 0 : index
    %187 = vector.load %arg2[%c6, %c0_121] : memref<16x96xf32, #tpu.memory_space<vmem>>, vector<1x32xf32>
    %c7 = arith.constant 7 : index
    %c0_122 = arith.constant 0 : index
    %188 = vector.load %arg2[%c7, %c0_122] : memref<16x96xf32, #tpu.memory_space<vmem>>, vector<1x32xf32>
    %cst_123 = arith.constant dense<0.000000e+00> : vector<16xf32>
    %189 = vector.multi_reduction <add>, %186, %cst_123 [1] : vector<16x32xf32> to vector<16xf32>
    %190 = vector.shape_cast %189 : vector<16xf32> to vector<16x1xf32>
    %cst_124 = arith.constant 3.200000e+01 : f32
    %191 = vector.broadcast %cst_124 : f32 to vector<16x1xf32>
    %192 = arith.divf %190, %191 : vector<16x1xf32>
    %193 = vector.broadcast %192 : vector<16x1xf32> to vector<16x32xf32>
    %194 = arith.subf %186, %193 : vector<16x32xf32>
    %195 = arith.mulf %194, %194 : vector<16x32xf32>
    %cst_125 = arith.constant dense<0.000000e+00> : vector<16xf32>
    %196 = vector.multi_reduction <add>, %195, %cst_125 [1] : vector<16x32xf32> to vector<16xf32>
    %197 = vector.shape_cast %196 : vector<16xf32> to vector<16x1xf32>
    %cst_126 = arith.constant 3.200000e+01 : f32
    %198 = vector.broadcast %cst_126 : f32 to vector<16x1xf32>
    %199 = arith.divf %197, %198 : vector<16x1xf32>
    %200 = vector.broadcast %192 : vector<16x1xf32> to vector<16x32xf32>
    %201 = arith.subf %186, %200 : vector<16x32xf32>
    %cst_127 = arith.constant 9.99999974E-6 : f32
    %202 = vector.broadcast %cst_127 : f32 to vector<16x1xf32>
    %203 = arith.addf %199, %202 : vector<16x1xf32>
    %204 = math.rsqrt %203 : vector<16x1xf32>
    %205 = vector.broadcast %204 : vector<16x1xf32> to vector<16x32xf32>
    %206 = arith.mulf %201, %205 : vector<16x32xf32>
    %207 = vector.broadcast %187 : vector<1x32xf32> to vector<16x32xf32>
    %208 = arith.mulf %206, %207 : vector<16x32xf32>
    %209 = vector.broadcast %188 : vector<1x32xf32> to vector<16x32xf32>
    %210 = arith.addf %208, %209 : vector<16x32xf32>
    %211 = tpu.iota {dimensions = array<i32: 1>} : vector<2x16xi32>
    %212 = tpu.iota {dimensions = array<i32: 0>} : vector<2x16xi32>
    %c8_i32 = arith.constant 8 : i32
    %213 = vector.broadcast %c8_i32 : i32 to vector<2x16xi32>
    %214 = arith.muli %212, %213 : vector<2x16xi32>
    %c7_i32 = arith.constant 7 : i32
    %215 = vector.broadcast %c7_i32 : i32 to vector<2x16xi32>
    %216 = arith.addi %214, %215 : vector<2x16xi32>
    %217 = arith.cmpi eq, %211, %216 : vector<2x16xi32>
    %218 = arith.extui %217 : vector<2x16xi1> to vector<2x16xi32>
    %219 = arith.sitofp %218 : vector<2x16xi32> to vector<2x16xf32>
    %cst_128 = arith.constant dense<0.000000e+00> : vector<2x32xf32>
    %220 = tpu.matmul %219, %210, %cst_128 {dimension_numbers = #tpu.dot_dimension_numbers<[1], [0], [0], [1], [0, 0, 1, 1], [], []>} : vector<2x16xf32>, vector<16x32xf32>, vector<2x32xf32> -> vector<2x32xf32>
    %c160 = arith.constant 160 : index
    %c0_129 = arith.constant 0 : index
    %221 = vector.load %arg1[%c160, %c0_129] : memref<504x96xf32, #tpu.memory_space<vmem>>, vector<32x32xf32>
    %cst_130 = arith.constant dense<0.000000e+00> : vector<2x32xf32>
    %222 = tpu.matmul %220, %221, %cst_130 {dimension_numbers = #tpu.dot_dimension_numbers<[1], [0], [0], [1], [0, 0, 1, 1], [], []>} : vector<2x32xf32>, vector<32x32xf32>, vector<2x32xf32> -> vector<2x32xf32>
    %c8_131 = arith.constant 8 : index
    %c0_132 = arith.constant 0 : index
    %223 = vector.load %arg2[%c8_131, %c0_132] : memref<16x96xf32, #tpu.memory_space<vmem>>, vector<1x32xf32>
    %224 = vector.broadcast %223 : vector<1x32xf32> to vector<2x32xf32>
    %225 = arith.addf %222, %224 : vector<2x32xf32>
    %c192 = arith.constant 192 : index
    %c0_133 = arith.constant 0 : index
    %226 = vector.load %arg1[%c192, %c0_133] : memref<504x96xf32, #tpu.memory_space<vmem>>, vector<32x32xf32>
    %cst_134 = arith.constant dense<0.000000e+00> : vector<2x32xf32>
    %227 = tpu.matmul %225, %226, %cst_134 {dimension_numbers = #tpu.dot_dimension_numbers<[1], [0], [0], [1], [0, 0, 1, 1], [], []>} : vector<2x32xf32>, vector<32x32xf32>, vector<2x32xf32> -> vector<2x32xf32>
    %c9 = arith.constant 9 : index
    %c0_135 = arith.constant 0 : index
    %228 = vector.load %arg2[%c9, %c0_135] : memref<16x96xf32, #tpu.memory_space<vmem>>, vector<1x32xf32>
    %229 = vector.broadcast %228 : vector<1x32xf32> to vector<2x32xf32>
    %230 = arith.addf %227, %229 : vector<2x32xf32>
    %c224 = arith.constant 224 : index
    %c0_136 = arith.constant 0 : index
    %231 = vector.load %arg1[%c224, %c0_136] : memref<504x96xf32, #tpu.memory_space<vmem>>, vector<32x1xf32>
    %cst_137 = arith.constant dense<0.000000e+00> : vector<2x1xf32>
    %232 = tpu.matmul %230, %231, %cst_137 {dimension_numbers = #tpu.dot_dimension_numbers<[1], [0], [0], [1], [0, 0, 1, 1], [], []>} : vector<2x32xf32>, vector<32x1xf32>, vector<2x1xf32> -> vector<2x1xf32>
    %c10 = arith.constant 10 : index
    %c0_138 = arith.constant 0 : index
    %233 = vector.load %arg2[%c10, %c0_138] : memref<16x96xf32, #tpu.memory_space<vmem>>, vector<1x1xf32>
    %234 = vector.broadcast %233 : vector<1x1xf32> to vector<2x1xf32>
    %235 = arith.addf %232, %234 : vector<2x1xf32>
    %c256 = arith.constant 256 : index
    %c0_139 = arith.constant 0 : index
    %236 = vector.load %arg1[%c256, %c0_139] : memref<504x96xf32, #tpu.memory_space<vmem>>, vector<1x33xf32>
    %237 = vector.broadcast %235 : vector<2x1xf32> to vector<2x33xf32>
    %238 = vector.broadcast %236 : vector<1x33xf32> to vector<2x33xf32>
    %239 = arith.mulf %237, %238 : vector<2x33xf32>
    %c257 = arith.constant 257 : index
    %c0_140 = arith.constant 0 : index
    %240 = vector.load %arg1[%c257, %c0_140] : memref<504x96xf32, #tpu.memory_space<vmem>>, vector<32x33xf32>
    %cst_141 = arith.constant dense<0.000000e+00> : vector<2x33xf32>
    %241 = tpu.matmul %225, %240, %cst_141 {dimension_numbers = #tpu.dot_dimension_numbers<[1], [0], [0], [1], [0, 0, 1, 1], [], []>} : vector<2x32xf32>, vector<32x33xf32>, vector<2x33xf32> -> vector<2x33xf32>
    %242 = arith.addf %239, %241 : vector<2x33xf32>
    %c11 = arith.constant 11 : index
    %c0_142 = arith.constant 0 : index
    %243 = vector.load %arg2[%c11, %c0_142] : memref<16x96xf32, #tpu.memory_space<vmem>>, vector<1x33xf32>
    %244 = vector.broadcast %243 : vector<1x33xf32> to vector<2x33xf32>
    %245 = arith.addf %242, %244 : vector<2x33xf32>
    %c296 = arith.constant 296 : index
    %c0_143 = arith.constant 0 : index
    %246 = vector.load %arg1[%c296, %c0_143] : memref<504x96xf32, #tpu.memory_space<vmem>>, vector<33x20xf32>
    %cst_144 = arith.constant dense<0.000000e+00> : vector<2x20xf32>
    %247 = tpu.matmul %245, %246, %cst_144 {dimension_numbers = #tpu.dot_dimension_numbers<[1], [0], [0], [1], [0, 0, 1, 1], [], []>} : vector<2x33xf32>, vector<33x20xf32>, vector<2x20xf32> -> vector<2x20xf32>
    %c12 = arith.constant 12 : index
    %c0_145 = arith.constant 0 : index
    %248 = vector.load %arg2[%c12, %c0_145] : memref<16x96xf32, #tpu.memory_space<vmem>>, vector<1x20xf32>
    %249 = vector.broadcast %248 : vector<1x20xf32> to vector<2x20xf32>
    %250 = arith.addf %247, %249 : vector<2x20xf32>
    %c336 = arith.constant 336 : index
    %c0_146 = arith.constant 0 : index
    %251 = vector.load %arg1[%c336, %c0_146] : memref<504x96xf32, #tpu.memory_space<vmem>>, vector<20x53xf32>
    %cst_147 = arith.constant dense<0.000000e+00> : vector<2x53xf32>
    %252 = tpu.matmul %250, %251, %cst_147 {dimension_numbers = #tpu.dot_dimension_numbers<[1], [0], [0], [1], [0, 0, 1, 1], [], []>} : vector<2x20xf32>, vector<20x53xf32>, vector<2x53xf32> -> vector<2x53xf32>
    %c356 = arith.constant 356 : index
    %c0_148 = arith.constant 0 : index
    %253 = vector.load %arg1[%c356, %c0_148] : memref<504x96xf32, #tpu.memory_space<vmem>>, vector<1x53xf32>
    %254 = vector.broadcast %235 : vector<2x1xf32> to vector<2x53xf32>
    %255 = vector.broadcast %253 : vector<1x53xf32> to vector<2x53xf32>
    %256 = arith.mulf %254, %255 : vector<2x53xf32>
    %257 = arith.addf %252, %256 : vector<2x53xf32>
    %c357 = arith.constant 357 : index
    %c0_149 = arith.constant 0 : index
    %258 = vector.load %arg1[%c357, %c0_149] : memref<504x96xf32, #tpu.memory_space<vmem>>, vector<32x53xf32>
    %cst_150 = arith.constant dense<0.000000e+00> : vector<2x53xf32>
    %259 = tpu.matmul %225, %258, %cst_150 {dimension_numbers = #tpu.dot_dimension_numbers<[1], [0], [0], [1], [0, 0, 1, 1], [], []>} : vector<2x32xf32>, vector<32x53xf32>, vector<2x53xf32> -> vector<2x53xf32>
    %260 = arith.addf %257, %259 : vector<2x53xf32>
    %c13 = arith.constant 13 : index
    %c0_151 = arith.constant 0 : index
    %261 = vector.load %arg2[%c13, %c0_151] : memref<16x96xf32, #tpu.memory_space<vmem>>, vector<1x53xf32>
    %262 = vector.broadcast %261 : vector<1x53xf32> to vector<2x53xf32>
    %263 = arith.addf %260, %262 : vector<2x53xf32>
    %c392 = arith.constant 392 : index
    %c0_152 = arith.constant 0 : index
    %264 = vector.load %arg1[%c392, %c0_152] : memref<504x96xf32, #tpu.memory_space<vmem>>, vector<53x53xf32>
    %cst_153 = arith.constant dense<0.000000e+00> : vector<2x53xf32>
    %265 = tpu.matmul %263, %264, %cst_153 {dimension_numbers = #tpu.dot_dimension_numbers<[1], [0], [0], [1], [0, 0, 1, 1], [], []>} : vector<2x53xf32>, vector<53x53xf32>, vector<2x53xf32> -> vector<2x53xf32>
    %c14 = arith.constant 14 : index
    %c0_154 = arith.constant 0 : index
    %266 = vector.load %arg2[%c14, %c0_154] : memref<16x96xf32, #tpu.memory_space<vmem>>, vector<1x53xf32>
    %267 = vector.broadcast %266 : vector<1x53xf32> to vector<2x53xf32>
    %268 = arith.addf %265, %267 : vector<2x53xf32>
    %c448 = arith.constant 448 : index
    %c0_155 = arith.constant 0 : index
    %269 = vector.load %arg1[%c448, %c0_155] : memref<504x96xf32, #tpu.memory_space<vmem>>, vector<53x5xf32>
    %cst_156 = arith.constant dense<0.000000e+00> : vector<2x5xf32>
    %270 = tpu.matmul %268, %269, %cst_156 {dimension_numbers = #tpu.dot_dimension_numbers<[1], [0], [0], [1], [0, 0, 1, 1], [], []>} : vector<2x53xf32>, vector<53x5xf32>, vector<2x5xf32> -> vector<2x5xf32>
    %c15 = arith.constant 15 : index
    %c0_157 = arith.constant 0 : index
    %271 = vector.load %arg2[%c15, %c0_157] : memref<16x96xf32, #tpu.memory_space<vmem>>, vector<1x5xf32>
    %272 = vector.broadcast %271 : vector<1x5xf32> to vector<2x5xf32>
    %273 = arith.addf %270, %272 : vector<2x5xf32>
    %c0_158 = arith.constant 0 : index
    %c0_159 = arith.constant 0 : index
    %274 = vector.load %arg3[%c0_158, %c0_159] : memref<2x26xf32, #tpu.memory_space<vmem>>, vector<2x1xf32>
    tpu.vector_store %arg3[%c0_158, %c0_159], %235 {strides = array<i32>} : memref<2x26xf32, #tpu.memory_space<vmem>>, vector<2x1xf32>,
    %c0_160 = arith.constant 0 : index
    %c1_161 = arith.constant 1 : index
    %275 = vector.load %arg3[%c0_160, %c1_161] : memref<2x26xf32, #tpu.memory_space<vmem>>, vector<2x20xf32>
    tpu.vector_store %arg3[%c0_160, %c1_161], %250 {strides = array<i32>} : memref<2x26xf32, #tpu.memory_space<vmem>>, vector<2x20xf32>,
    %c0_162 = arith.constant 0 : index
    %c21 = arith.constant 21 : index
    %276 = vector.load %arg3[%c0_162, %c21] : memref<2x26xf32, #tpu.memory_space<vmem>>, vector<2x5xf32>
    tpu.vector_store %arg3[%c0_162, %c21], %273 {strides = array<i32>} : memref<2x26xf32, #tpu.memory_space<vmem>>, vector<2x5xf32>,
    return
  }
}

</mosaic_0001>

<bundles_post_ra>
// kernel: nmstpp_forward.1
= control target key start
LH: loop header
LB: loop body
LE: loop exit
PB: predicated region body
PF: predicated region fallthrough
CT: control target
= control target key end

     0   :  { %vm23_vm0 = vcmask 261120   ;;  %s1955_s0 = inlined_call_operand.vmem [shape: f32[16,32], index: 0, kind: input, shape index: {}]   ;;  %s1956_s1 = inlined_call_operand.vmem [shape: f32[504,96], index: 1, kind: input, shape index: {}]   ;;  %s1957_s2 = inlined_call_operand.vmem [shape: f32[16,96], index: 2, kind: input, shape index: {}]   ;;  %s1958_s3 = inlined_call_operand.hbm [shape: f32[2,26], index: 3, kind: output, shape index: {}]  }
   0x1   :  { %v20_v0 = vld [vmem:[%s1956_s1 + $0x18] sm:$0xff]  ;;  %v19_v1 = vld [vmem:[%s1956_s1 + $0x10] sm:$0xff]  ;;  %v18_v2 = vld [vmem:[%s1956_s1 + $0x8] sm:$0xff] }
   0x2   :  { %42 = vmatpush.msra.mxu0 %v20_v0  ;;  %v17_v3 = vld [vmem:[%s1956_s1] sm:$0xff] }
   0x3   :  { %v1537_v4 = vld [vmem:[%s1955_s0] sm:$0xff] }
   0x4   :  { %43 = vmatpush.msra.mxu0 %v19_v1 }
   0x6   :  { %44 = vmatpush.msra.mxu0 %v18_v2 }
   0x8   :  { %45 = vmatpush.msra.mxu0 %v17_v3 }
   0x9   :  { %1327 = vmatmul.msk.f32.vlgmr.msra.gmra.mxu0 %vm23_vm0, %v1537_v4 }
   0xa   :  { %8 = vsyncpa [#allocation5], 0  ;;  %v1396_v5 = vld [vmem:[%s1957_s2] ss:$0 sm:$0xff]  ;;  %vm53_vm1 = vcmask 785408   ;;  %s1482_s24 = smov 96  }
   0xb   :  { %s1483_s25 = smov 112   ;;  %s1484_s26 = smov 120   ;;  %v1559_v10 = vld [vmem:[%s1955_s0 + $0x8] sm:$0xff]  ;;  %vm61_vm2 = vcmask 64512  }
   0xc   :  { %s1485_s27 = smov 88   ;;  %s1486_s28 = smov 80  }
   0xd   :  { %s1487_s0 = smov 56   ;;  %s1488_s4 = smov 72  }
   0xe   :  { %s1489_s5 = smov 64   ;;  %s1490_s6 = smov 104  }
   0xf   :  { %s1491_s7 = smov 48   ;;  %s1492_s8 = smov 40  }
  0x10   :  { %s1493_s9 = smov 8   ;;  %s1494_s10 = smov 16  }
  0x11   :  { %1328 = vmatmul.msk.f32.gmra.mxu0 %vm23_vm0, %v1559_v10  ;;  %s1495_s11 = smov 24   ;;  %s1499_s14 = smov 1  }
  0x12   :  { %s1500_s23 = smov 21  }
  0x86   :  { %v47_v6 = vpop.f32.mrf.mxu0 }
  0x87   :  { %v48_v7 = vadd.f32 %v1396_v5, %v47_v6 }
  0x89   :  { %54 = vst.msk [vmem:[#allocation2] sm:$0xff] %vm53_vm1, %v48_v7 }
  0x8e   :  { %v50_v16 = vpop.f32.mrf.mxu0 }
  0x8f   :  { %v51_v17 = vadd.f32 %v1396_v5, %v50_v16 }
  0x90   :  { %v1545_v8 = vld [vmem:[#allocation2] sm:$0xff] }
  0x91   :  { %59 = vrot.lane.b32.xlu0 %v1545_v8, %s1482_s24  ;;  %v227_v9 = vmul.f32 0.35355338, %v1545_v8  ;;  %55 = vst.msk [vmem:[#allocation2 + $0x8] sm:$0xff] %vm53_vm1, %v51_v17 }
  0x93   :  { %229 = vrot.lane.b32.xlu2 %v227_v9, %s1483_s25  ;;  %141 = vrot.lane.b32.xlu1 %v227_v9, %s1484_s26 }
  0x98   :  { %v1576_v24 = vld [vmem:[#allocation2 + $0x8] sm:$0xff] }
  0x99   :  { %144 = vrot.lane.b32.xlu0 %v1545_v8, %s1485_s27  ;;  %v1584_v25 = vmul.f32 0.35355338, %v1576_v24 }
  0x9b   :  { %232 = vrot.lane.b32.xlu1 %v1545_v8, %s1486_s28 }
  0xed   :  { %v230_v15 = vpop.permute.xlu2 %229 }
 0x103   :  { %v60_v11 = vpop.permute.xlu0 %59 }
 0x104   :  { %1329 = vmatpush.xpose.msk.msra.mxu1 %vm61_vm2, %v60_v11 }
 0x105   :  { %v142_v12 = vpop.permute.xlu1 %141 }
 0x107   :  { %1330 = vmatmul.msk.f32.vlgmr.msra.gmra.mxu1 %vm61_vm2, %v227_v9 }
 0x10b   :  { %v145_v13 = vpop.permute.xlu0 %144 }
 0x10c   :  { %1332 = vmatpush.xpose.msk.msrb.mxu0 %vm61_vm2, %v145_v13 }
 0x10d   :  { %v233_v14 = vpop.permute.xlu1 %232 }
 0x10e   :  { %1335 = vmatpush.xpose.msk.msrb.mxu1 %vm61_vm2, %v233_v14 }
 0x10f   :  { %1333 = vmatmul.msk.f32.vlgmr.msrb.gmra.mxu0 %vm61_vm2, %v142_v12 }
 0x111   :  { %1336 = vmatmul.msk.f32.vlgmr.msrb.gmra.mxu1 %vm61_vm2, %v230_v15 }
 0x184   :  { %v84_v18 = vpop.f32.mrf.mxu1 }
 0x185   :  { %v87_v19 = vsel %vm61_vm2, %v84_v18, -inf }
 0x186   :  { %88 = vmax.xlane.f32.xlu2 %v87_v19 }
 0x18c   :  { %v167_v20 = vpop.f32.mrf.mxu0 }
 0x18d   :  { %v170_v21 = vsel %vm61_vm2, %v167_v20, -inf }
 0x18e   :  { %171 = vmax.xlane.f32.xlu0 %v170_v21  ;;  %v255_v22 = vpop.f32.mrf.mxu1 }
 0x18f   :  { %v258_v23 = vsel %vm61_vm2, %v255_v22, -inf }
 0x190   :  { %259 = vmax.xlane.f32.xlu1 %v258_v23 }
 0x19e   :  { %194 = vrot.lane.b32.xlu2 %v1545_v8, %s1487_s0 }
 0x1a2   :  { %320 = vrot.lane.b32.xlu0 %v1545_v8, %s1488_s4 }
 0x1a6   :  { %405 = vrot.lane.b32.xlu2 %v1576_v24, %s1482_s24  ;;  %s1501_s24 = smov [#allocation4]  }
 0x1a9   :  { %111 = vrot.lane.b32.xlu1 %v1545_v8, %s1489_s5 }
 0x1aa   :  { %317 = vrot.lane.b32.xlu0 %v227_v9, %s1490_s6 }
 0x1b1   :  { %282 = vrot.lane.b32.xlu1 %v1545_v8, %s1491_s7 }
 0x1b2   :  { %486 = vrot.lane.b32.xlu0 %v1584_v25, %s1484_s26 }
 0x1b9   :  { %489 = vrot.lane.b32.xlu1 %v1576_v24, %s1485_s27  ;;  %s1318_s27 = sshll.u32 %s1958_s3, 4  ;;  %s1319_s27 = int_to_ptr.hbm [resolvable:$true] %s1318_s27 }
 0x1c1   :  { %663 = vrot.lane.b32.xlu1 %v1576_v24, %s1488_s4 }
 0x1f9   :  { %v89_v26 = vpop.xlane.xlu2 %88 }
 0x1fa   :  { %v90_v27 = vsub.f32 %v84_v18, %v89_v26 }
 0x1fc   :  { %v91_v28 = vmul.f32 1.442695, %v90_v27 }
 0x1fe   :  { %1414 = vpow2.f32 %v91_v28 }
 0x201   :  { %v172_v29 = vpop.xlane.xlu0 %171  ;;  %v195_v41 = vpop.permute.xlu2 %194 }
 0x202   :  { %v173_v30 = vsub.f32 %v167_v20, %v172_v29 }
 0x203   :  { %v260_v31 = vpop.xlane.xlu1 %259 }
 0x204   :  { %v1415_v32 = vpop.eup %1414  ;;  %v174_v33 = vmul.f32 1.442695, %v173_v30  ;;  %v261_v34 = vsub.f32 %v255_v22, %v260_v31 }
 0x205   :  { %v93_v35 = vsel %vm61_vm2, %v1415_v32, 0.0 }
 0x206   :  { %1416 = vpow2.f32 %v174_v33  ;;  %v262_v36 = vmul.f32 1.442695, %v261_v34  ;;  %94 = vadd.xlane.f32.xlu2 %v93_v35 }
 0x208   :  { %1418 = vpow2.f32 %v262_v36 }
 0x209   :  { %v406_v44 = vpop.permute.xlu2 %405 }
 0x20c   :  { %v1594_v37 = vpop.eup %1416 }
 0x20d   :  { %v176_v38 = vsel %vm61_vm2, %v1594_v37, 0.0 }
 0x20e   :  { %v1598_v39 = vpop.eup %1418  ;;  %177 = vadd.xlane.f32.xlu2 %v176_v38 }
 0x20f   :  { %v264_v40 = vsel %vm61_vm2, %v1598_v39, 0.0 }
 0x210   :  { %265 = vadd.xlane.f32.xlu0 %v264_v40 }
 0x214   :  { %v321_v45 = vpop.permute.xlu0 %320 }
 0x21b   :  { %v112_v42 = vpop.permute.xlu1 %111 }
 0x21c   :  { %132 = vmatpush.msra.mxu2 %v112_v42  ;;  %v318_v46 = vpop.permute.xlu0 %317 }
 0x21e   :  { %215 = vmatpush.msrb.mxu2 %v195_v41 }
 0x223   :  { %v283_v43 = vpop.permute.xlu1 %282 }
 0x224   :  { %573 = vrot.lane.b32.xlu0 %v1584_v25, %s1483_s25  ;;  %303 = vmatpush.msra.mxu3 %v283_v43  ;;  %v487_v48 = vpop.permute.xlu0 %486  ;;  %s1316_s25 = sshll.u32 %s1501_s24, 4  ;;  %s1317_s25 = int_to_ptr.vmem [resolvable:$true] %s1316_s25 }
 0x226   :  { %1341 = vmatpush.xpose.msk.msrb.mxu3 %vm61_vm2, %v406_v44  ;;  %576 = vrot.lane.b32.xlu2 %v1576_v24, %s1486_s28 }
 0x22b   :  { %v490_v19 = vpop.permute.xlu1 %489 }
 0x22e   :  { %660 = vrot.lane.b32.xlu2 %v1584_v25, %s1490_s6 }
 0x233   :  { %v664_v27 = vpop.permute.xlu1 %663 }
 0x279   :  { %v95_v47 = vpop.xlane.xlu2 %94 }
 0x27a   :  { %1420 = vrcp.f32 %v95_v47  ;;  %v107_v54 = vand.u32 2147483648, %v95_v47  ;;  %v105_v56 = vand.u32 2147483647, %v95_v47  ;;  %vm101_vm4 = vweird.f32 %v95_v47 }
 0x27c   :  { %v108_v59 = vor.u32 1.1754944e-38, %v107_v54  ;;  %vm106_vm6 = vcmp.eq.f32.partialorder %v105_v56, 8.507059e+37 }
 0x280   :  { %v1421_v49 = vpop.eup %1420 }
 0x281   :  { %v97_v50 = vmul.f32 %v1421_v49, %v95_v47  ;;  %v178_v51 = vpop.xlane.xlu2 %177  ;;  %vm102_vm3 = vweird.f32 %v1421_v49 }
 0x282   :  { %1422 = vrcp.f32 %v178_v51  ;;  %vm103_vm5 = vmor %vm101_vm4, %vm102_vm3  ;;  %v190_v3 = vand.u32 2147483648, %v178_v51  ;;  %v188_v6 = vand.u32 2147483647, %v178_v51  ;;  %vm184_vm8 = vweird.f32 %v178_v51 }
 0x283   :  { %v98_v52 = vsub.f32 1.0, %v97_v50  ;;  %v266_v53 = vpop.xlane.xlu0 %265 }
 0x284   :  { %1424 = vrcp.f32 %v266_v53  ;;  %v278_v9 = vand.u32 2147483648, %v266_v53  ;;  %v276_v13 = vand.u32 2147483647, %v266_v53  ;;  %v191_v14 = vor.u32 1.1754944e-38, %v190_v3 }
 0x285   :  { %v99_v55 = vmul.f32 %v1421_v49, %v98_v52  ;;  %vm189_vm11 = vcmp.eq.f32.partialorder %v188_v6, 8.507059e+37  ;;  %vm272_vm12 = vweird.f32 %v266_v53 }
 0x286   :  { %v279_v17 = vor.u32 1.1754944e-38, %v278_v9  ;;  %vm277_vm14 = vcmp.eq.f32.partialorder %v276_v13, 8.507059e+37 }
 0x287   :  { %v100_v57 = vadd.f32 %v1421_v49, %v99_v55 }
 0x288   :  { %v1423_v58 = vpop.eup %1422 }
 0x289   :  { %v180_v60 = vmul.f32 %v1423_v58, %v178_v51  ;;  %v104_v61 = vsel %vm103_vm5, %v1421_v49, %v100_v57  ;;  %vm185_vm7 = vweird.f32 %v1423_v58  ;;  %v577_v26 = vpop.permute.xlu2 %576 }
 0x28a   :  { %v1425_v62 = vpop.eup %1424  ;;  %v109_v63 = vsel %vm106_vm6, %v108_v59, %v104_v61  ;;  %vm186_vm10 = vmor %vm184_vm8, %vm185_vm7 }
 0x28b   :  { %v181_v0 = vsub.f32 1.0, %v180_v60  ;;  %v268_v1 = vmul.f32 %v1425_v62, %v266_v53  ;;  %v110_v2 = vmul.f32 %v1415_v32, %v109_v63  ;;  %vm273_vm9 = vweird.f32 %v1425_v62 }
 0x28c   :  { %vm274_vm13 = vmor %vm272_vm12, %vm273_vm9 }
 0x28d   :  { %v182_v5 = vmul.f32 %v1423_v58, %v181_v0  ;;  %v269_v7 = vsub.f32 1.0, %v268_v1  ;;  %1331 = vmatmul.msk.f32.vlgmr.msra.gmra.mxu2 %vm61_vm2, %v110_v2 }
 0x28e   :  { %1338 = vmatpush.xpose.msk.msra.mxu2 %vm61_vm2, %v321_v45 }
 0x28f   :  { %v183_v11 = vadd.f32 %v1423_v58, %v182_v5  ;;  %v270_v12 = vmul.f32 %v1425_v62, %v269_v7 }
 0x291   :  { %v187_v15 = vsel %vm186_vm10, %v1423_v58, %v183_v11  ;;  %v271_v16 = vadd.f32 %v1425_v62, %v270_v12  ;;  %v661_v29 = vpop.permute.xlu2 %660 }
 0x292   :  { %v192_v18 = vsel %vm189_vm11, %v191_v14, %v187_v15 }
 0x293   :  { %v193_v20 = vmul.f32 %v1594_v37, %v192_v18  ;;  %v275_v21 = vsel %vm274_vm13, %v1425_v62, %v271_v16 }
 0x294   :  { %v280_v22 = vsel %vm277_vm14, %v279_v17, %v275_v21 }
 0x295   :  { %1334 = vmatmul.msk.f32.vlgmr.msrb.gmra.mxu2 %vm61_vm2, %v193_v20  ;;  %v281_v23 = vmul.f32 %v1598_v39, %v280_v22 }
 0x296   :  { %1344 = vmatpush.xpose.msk.msrb.mxu2 %vm61_vm2, %v490_v19  ;;  %v574_v28 = vpop.permute.xlu0 %573 }
 0x297   :  { %1337 = vmatmul.msk.f32.vlgmr.msra.gmra.mxu3 %vm61_vm2, %v281_v23 }
 0x298   :  { %1347 = vmatpush.xpose.msk.msra.mxu3 %vm61_vm2, %v577_v26 }
 0x29d   :  { %1339 = vmatmul.msk.f32.vlgmr.msra.gmra.mxu2 %vm61_vm2, %v318_v46 }
 0x29e   :  { %1350 = vmatpush.xpose.msk.msra.mxu2 %vm61_vm2, %v664_v27 }
 0x29f   :  { %1342 = vmatmul.msk.f32.vlgmr.msrb.gmra.mxu3 %vm61_vm2, %v1584_v25 }
 0x2a5   :  { %1345 = vmatmul.msk.f32.vlgmr.msrb.gmra.mxu2 %vm61_vm2, %v487_v48 }
 0x2a7   :  { %1348 = vmatmul.msk.f32.vlgmr.msra.gmra.mxu3 %vm61_vm2, %v574_v28 }
 0x2ad   :  { %1351 = vmatmul.msk.f32.vlgmr.msra.gmra.mxu2 %vm61_vm2, %v661_v29 }
 0x310   :  { %v134_v30 = vpop.f32.mrf.mxu2 }
 0x311   :  { %137 = vst.msk [vmem:[#allocation3] sm:$0xff] %vm61_vm2, %v134_v30 }
 0x318   :  { %v217_v31 = vpop.f32.mrf.mxu2 }
 0x31a   :  { %v1625_v32 = vpop.f32.mrf.mxu3 }
 0x320   :  { %v343_v33 = vpop.f32.mrf.mxu2 }
 0x321   :  { %v346_v34 = vsel %vm61_vm2, %v343_v33, -inf }
 0x322   :  { %v429_v35 = vpop.f32.mrf.mxu3  ;;  %347 = vmax.xlane.f32.xlu1 %v346_v34 }
 0x323   :  { %v432_v25 = vsel %vm61_vm2, %v429_v35, -inf }
 0x324   :  { %433 = vmax.xlane.f32.xlu0 %v432_v25 }
 0x328   :  { %v512_v36 = vpop.f32.mrf.mxu2 }
 0x329   :  { %v515_v37 = vsel %vm61_vm2, %v512_v36, -inf }
 0x32a   :  { %516 = vmax.xlane.f32.xlu2 %v515_v37  ;;  %v599_v38 = vpop.f32.mrf.mxu3 }
 0x32b   :  { %v602_v39 = vsel %vm61_vm2, %v599_v38, -inf }
 0x32c   :  { %603 = vmax.xlane.f32.xlu1 %v602_v39 }
 0x330   :  { %v686_v40 = vpop.f32.mrf.mxu2 }
 0x331   :  { %v689_v41 = vsel %vm61_vm2, %v686_v40, -inf }
 0x332   :  { %690 = vmax.xlane.f32.xlu0 %v689_v41 }
 0x342   :  { %456 = vrot.lane.b32.xlu2 %v1576_v24, %s1489_s5 }
 0x346   :  { %370 = vrot.lane.b32.xlu0 %v1545_v8, %s1492_s8 }
 0x395   :  { %v348_v42 = vpop.xlane.xlu1 %347 }
 0x396   :  { %v349_v43 = vsub.f32 %v343_v33, %v348_v42 }
 0x397   :  { %v434_v44 = vpop.xlane.xlu0 %433 }
 0x398   :  { %v350_v45 = vmul.f32 1.442695, %v349_v43  ;;  %v435_v46 = vsub.f32 %v429_v35, %v434_v44 }
 0x39a   :  { %1426 = vpow2.f32 %v350_v45  ;;  %v436_v47 = vmul.f32 1.442695, %v435_v46 }
 0x39c   :  { %1428 = vpow2.f32 %v436_v47 }
 0x39d   :  { %v517_v48 = vpop.xlane.xlu2 %516 }
 0x39e   :  { %v518_v49 = vsub.f32 %v512_v36, %v517_v48 }
 0x39f   :  { %v604_v50 = vpop.xlane.xlu1 %603 }
 0x3a0   :  { %v1636_v51 = vpop.eup %1426  ;;  %v519_v52 = vmul.f32 1.442695, %v518_v49  ;;  %v605_v53 = vsub.f32 %v599_v38, %v604_v50 }
 0x3a1   :  { %v352_v54 = vsel %vm61_vm2, %v1636_v51, 0.0 }
 0x3a2   :  { %v1640_v55 = vpop.eup %1428  ;;  %1430 = vpow2.f32 %v519_v52  ;;  %v606_v8 = vmul.f32 1.442695, %v605_v53  ;;  %353 = vadd.xlane.f32.xlu2 %v352_v54 }
 0x3a3   :  { %v438_v56 = vsel %vm61_vm2, %v1640_v55, 0.0 }
 0x3a4   :  { %1432 = vpow2.f32 %v606_v8  ;;  %439 = vadd.xlane.f32.xlu1 %v438_v56 }
 0x3a5   :  { %v691_v57 = vpop.xlane.xlu0 %690  ;;  %v457_v58 = vpop.permute.xlu2 %456 }
 0x3a6   :  { %v692_v59 = vsub.f32 %v686_v40, %v691_v57  ;;  %477 = vmatpush.msra.mxu0 %v457_v58 }
 0x3a8   :  { %v1644_v60 = vpop.eup %1430  ;;  %v693_v61 = vmul.f32 1.442695, %v692_v59 }
 0x3a9   :  { %v521_v62 = vsel %vm61_vm2, %v1644_v60, 0.0 }
 0x3aa   :  { %v1648_v63 = vpop.eup %1432  ;;  %1434 = vpow2.f32 %v693_v61  ;;  %522 = vadd.xlane.f32.xlu0 %v521_v62 }
 0x3ab   :  { %v608_v0 = vsel %vm61_vm2, %v1648_v63, 0.0 }
 0x3ac   :  { %609 = vadd.xlane.f32.xlu2 %v608_v0 }
 0x3b0   :  { %v1652_v1 = vpop.eup %1434 }
 0x3b1   :  { %v695_v2 = vsel %vm61_vm2, %v1652_v1, 0.0 }
 0x3b2   :  { %696 = vadd.xlane.f32.xlu1 %v695_v2 }
 0x3b8   :  { %v371_v3 = vpop.permute.xlu0 %370 }
 0x3b9   :  { %391 = vmatpush.msra.mxu1 %v371_v3 }
 0x3be   :  { %626 = vrot.lane.b32.xlu0 %v1576_v24, %s1491_s7 }
 0x3c4   :  { %713 = vrot.lane.b32.xlu2 %v1576_v24, %s1492_s8 }
 0x3c6   :  { %221 = vrot.lane.b32.xlu0 %v217_v31, %s1493_s9 }
 0x3cb   :  { %539 = vrot.lane.b32.xlu1 %v1576_v24, %s1487_s0 }
 0x3d3   :  { %309 = vrot.lane.b32.xlu1 %v1625_v32, %s1494_s10 }
 0x415   :  { %v354_v5 = vpop.xlane.xlu2 %353 }
 0x416   :  { %1436 = vrcp.f32 %v354_v5  ;;  %v366_v16 = vand.u32 2147483648, %v354_v5  ;;  %v364_v17 = vand.u32 2147483647, %v354_v5  ;;  %vm360_vm1 = vweird.f32 %v354_v5 }
 0x417   :  { %v440_v6 = vpop.xlane.xlu1 %439 }
 0x418   :  { %1438 = vrcp.f32 %v440_v6  ;;  %v452_v19 = vand.u32 2147483648, %v440_v6  ;;  %v450_v22 = vand.u32 2147483647, %v440_v6  ;;  %v367_v26 = vor.u32 1.1754944e-38, %v366_v16  ;;  %v748_v16 = vld [vmem:[%s1956_s1 + $0x30] sm:$0xff] }
 0x419   :  { %vm365_vm5 = vcmp.eq.f32.partialorder %v364_v17, 8.507059e+37  ;;  %vm446_vm6 = vweird.f32 %v440_v6  ;;  %v746_v17 = vld [vmem:[%s1956_s1 + $0x20] sm:$0xff] }
 0x41a   :  { %v453_v32 = vor.u32 1.1754944e-38, %v452_v19  ;;  %vm451_vm8 = vcmp.eq.f32.partialorder %v450_v22, 8.507059e+37 }
 0x41c   :  { %v1437_v7 = vpop.eup %1436 }
 0x41d   :  { %v356_v9 = vmul.f32 %v1437_v7, %v354_v5  ;;  %v1665_v11 = vpop.xlane.xlu0 %522  ;;  %vm361_vm15 = vweird.f32 %v1437_v7 }
 0x41e   :  { %v1439_v12 = vpop.eup %1438  ;;  %1440 = vrcp.f32 %v1665_v11  ;;  %vm362_vm4 = vmor %vm360_vm1, %vm361_vm15  ;;  %v535_v54 = vand.u32 2147483648, %v1665_v11  ;;  %vm529_vm14 = vweird.f32 %v1665_v11  ;;  %vm224_vm1 = vcmask 130112  }
 0x41f   :  { %v357_v13 = vsub.f32 1.0, %v356_v9  ;;  %v442_v14 = vmul.f32 %v1439_v12, %v440_v6  ;;  %v610_v15 = vpop.xlane.xlu2 %609  ;;  %vm447_vm3 = vweird.f32 %v1439_v12 }
 0x420   :  { %1442 = vrcp.f32 %v610_v15  ;;  %vm448_vm7 = vmor %vm446_vm6, %vm447_vm3  ;;  %v622_v39 = vand.u32 2147483648, %v610_v15  ;;  %v620_v42 = vand.u32 2147483647, %v610_v15  ;;  %vm616_vm10 = vweird.f32 %v610_v15 }
 0x421   :  { %v358_v24 = vmul.f32 %v1437_v7, %v357_v13  ;;  %v443_v18 = vsub.f32 1.0, %v442_v14  ;;  %v536_v57 = vor.u32 1.1754944e-38, %v535_v54 }
 0x422   :  { %v623_v45 = vor.u32 1.1754944e-38, %v622_v39  ;;  %vm621_vm12 = vcmp.eq.f32.partialorder %v620_v42, 8.507059e+37 }
 0x423   :  { %v359_v20 = vadd.f32 %v1437_v7, %v358_v24  ;;  %v444_v21 = vmul.f32 %v1439_v12, %v443_v18  ;;  %v747_v24 = vld [vmem:[%s1956_s1 + $0x28] sm:$0xff] }
 0x424   :  { %v1441_v23 = vpop.eup %1440 }
 0x425   :  { %v363_v27 = vsel %vm362_vm4, %v1437_v7, %v359_v20  ;;  %v445_v28 = vadd.f32 %v1439_v12, %v444_v21  ;;  %v1668_v29 = vpop.xlane.xlu1 %696  ;;  %v525_v34 = vmul.f32 %v1441_v23, %v1665_v11  ;;  %vm530_vm13 = vweird.f32 %v1441_v23 }
 0x426   :  { %v1443_v30 = vpop.eup %1442  ;;  %v368_v31 = vsel %vm365_vm5, %v367_v26, %v363_v27  ;;  %1444 = vrcp.f32 %v1668_v29  ;;  %vm531_vm15 = vmor %vm529_vm14, %vm530_vm13  ;;  %v709_v62 = vand.u32 2147483648, %v1668_v29  ;;  %vm703_vm5 = vweird.f32 %v1668_v29  ;;  %v1397_v26 = vld [vmem:[%s1957_s2 + $0x1] ss:$0 sm:$0xff] }
 0x427   :  { %v449_v33 = vsel %vm448_vm7, %v1439_v12, %v445_v28  ;;  %v612_v35 = vmul.f32 %v1443_v30, %v610_v15  ;;  %v369_v36 = vmul.f32 %v1636_v51, %v368_v31  ;;  %v526_v40 = vsub.f32 1.0, %v525_v34  ;;  %v714_v5 = vpop.permute.xlu2 %713 }
 0x428   :  { %v454_v25 = vsel %vm451_vm8, %v453_v32, %v449_v33  ;;  %vm617_vm9 = vweird.f32 %v1443_v30  ;;  %v710_v6 = vor.u32 1.1754944e-38, %v709_v62  ;;  %vm312_vm8 = vcmask 195712   ;;  %v1398_v62 = vld [vmem:[%s1957_s2 + $0x2] ss:$0 sm:$0xff] }
 0x429   :  { %v613_v37 = vsub.f32 1.0, %v612_v35  ;;  %v455_v38 = vmul.f32 %v1640_v55, %v454_v25  ;;  %1340 = vmatmul.msk.f32.vlgmr.msra.gmra.mxu1 %vm61_vm2, %v369_v36  ;;  %vm618_vm11 = vmor %vm616_vm10, %vm617_vm9  ;;  %v527_v46 = vmul.f32 %v1441_v23, %v526_v40  ;;  %v533_v55 = vand.u32 2147483647, %v1665_v11 }
 0x42a   :  { %v1496_v35 = vmov 32.0  }
 0x42b   :  { %v614_v41 = vmul.f32 %v1443_v30, %v613_v37  ;;  %1343 = vmatmul.msk.f32.vlgmr.msra.gmra.mxu0 %vm61_vm2, %v455_v38  ;;  %v528_v52 = vadd.f32 %v1441_v23, %v527_v46  ;;  %vm534_vm3 = vcmp.eq.f32.partialorder %v533_v55, 8.507059e+37  ;;  %1446 = vrcp.f32 %v1496_v35  ;;  %v1401_v35 = vld [vmem:[%s1957_s2 + $0x5] ss:$0 sm:$0xff] }
 0x42c   :  { %v1445_v43 = vpop.eup %1444 }
 0x42d   :  { %v615_v44 = vadd.f32 %v1443_v30, %v614_v41  ;;  %v699_v48 = vmul.f32 %v1445_v43, %v1668_v29  ;;  %v532_v8 = vsel %vm531_vm15, %v1441_v23, %v528_v52  ;;  %vm704_vm4 = vweird.f32 %v1445_v43  ;;  %v842_v52 = vld [vmem:[%s1956_s1 + $0x40] sm:$0xff] }
 0x42e   :  { %v537_v59 = vsel %vm534_vm3, %v536_v57, %v532_v8  ;;  %vm705_vm6 = vmor %vm703_vm5, %vm704_vm4 }
 0x42f   :  { %v619_v47 = vsel %vm618_vm11, %v1443_v30, %v615_v44  ;;  %v700_v53 = vsub.f32 1.0, %v699_v48  ;;  %v538_v2 = vmul.f32 %v1644_v60, %v537_v59 }
 0x430   :  { %v624_v49 = vsel %vm621_vm12, %v623_v45, %v619_v47  ;;  %v627_v50 = vpop.permute.xlu0 %626 }
 0x431   :  { %647 = vmatpush.msrb.mxu0 %v627_v50  ;;  %v625_v51 = vmul.f32 %v1648_v63, %v624_v49  ;;  %v701_v56 = vmul.f32 %v1445_v43, %v700_v53  ;;  %v707_v63 = vand.u32 2147483647, %v1668_v29  ;;  %v1447_v25 = vpop.eup %1446  ;;  %v845_v49 = vld [vmem:[%s1956_s1 + $0x58] sm:$0xff]  ;;  %v844_v50 = vld [vmem:[%s1956_s1 + $0x50] sm:$0xff] }
 0x432   :  { %v792_v36 = vmul.f32 32.0, %v1447_v25  ;;  %vm796_vm9 = vweird.f32 %v1447_v25 }
 0x433   :  { %1349 = vmatmul.msk.f32.vlgmr.msrb.gmra.mxu0 %vm61_vm2, %v625_v51  ;;  %v702_v61 = vadd.f32 %v1445_v43, %v701_v56  ;;  %vm708_vm7 = vcmp.eq.f32.partialorder %v707_v63, 8.507059e+37  ;;  %v843_v51 = vld [vmem:[%s1956_s1 + $0x48] sm:$0xff] }
 0x434   :  { %v793_v37 = vsub.f32 1.0, %v792_v36  ;;  %866 = vmatpush.msra.mxu0 %v845_v49 }
 0x435   :  { %v706_v3 = vsel %vm705_vm6, %v1445_v43, %v702_v61 }
 0x436   :  { %v711_v7 = vsel %vm708_vm7, %v710_v6, %v706_v3  ;;  %v794_v38 = vmul.f32 %v1447_v25, %v793_v37  ;;  %867 = vmatpush.msra.mxu0 %v844_v50  ;;  %v886_v6 = vld [vmem:[%s1956_s1 + $0x98] sm:$0xff] }
 0x437   :  { %v712_v11 = vmul.f32 %v1652_v1, %v711_v7  ;;  %v749_v1 = vld [vmem:[%s1956_s1 + $0x38] sm:$0xff]  ;;  %v885_v7 = vld [vmem:[%s1956_s1 + $0x90] sm:$0xff]  ;;  %904 = vmatpush.msrb.mxu2 %v886_v6 }
 0x438   :  { %v222_v58 = vpop.permute.xlu0 %221  ;;  %770 = vmatpush.msrb.mxu3 %v749_v1  ;;  %v795_v39 = vadd.f32 %v1447_v25, %v794_v38  ;;  %868 = vmatpush.msra.mxu0 %v843_v51 }
 0x439   :  { %225 = vst.msk [vmem:[#allocation3] sm:$0xff] %vm224_vm1, %v222_v58  ;;  %905 = vmatpush.msrb.mxu2 %v885_v7 }
 0x43a   :  { %771 = vmatpush.msrb.mxu3 %v748_v16  ;;  %v1717_v40 = vsel %vm796_vm9, %v1447_v25, %v795_v39  ;;  %869 = vmatpush.msra.mxu0 %v842_v52  ;;  %vm982_vm9 = vcmask 130048  }
 0x43c   :  { %772 = vmatpush.msrb.mxu3 %v747_v24 }
 0x43d   :  { %v540_v0 = vpop.permute.xlu1 %539 }
 0x43e   :  { %560 = vmatpush.msrb.mxu1 %v540_v0  ;;  %773 = vmatpush.msrb.mxu3 %v746_v17 }
 0x43f   :  { %1346 = vmatmul.msk.f32.vlgmr.msrb.gmra.mxu1 %vm61_vm2, %v538_v2  ;;  %v1399_v2 = vld [vmem:[%s1957_s2 + $0x3] ss:$0 sm:$0xff] }
 0x440   :  { %734 = vmatpush.msra.mxu1 %v714_v5 }
 0x445   :  { %v310_v9 = vpop.permute.xlu1 %309 }
 0x446   :  { %313 = vst.msk [vmem:[#allocation3] sm:$0xff] %vm312_vm8, %v310_v9  ;;  %v884_v9 = vld [vmem:[%s1956_s1 + $0x88] sm:$0xff] }
 0x447   :  { %1352 = vmatmul.msk.f32.vlgmr.msra.gmra.mxu1 %vm61_vm2, %v712_v11  ;;  %906 = vmatpush.msrb.mxu2 %v884_v9 }
 0x4a6   :  { %v393_v12 = vpop.f32.mrf.mxu1 }
 0x4a7   :  { %397 = vrot.lane.b32.xlu2 %v393_v12, %s1495_s11 }
 0x4a8   :  { %v479_v60 = vpop.f32.mrf.mxu0 }
 0x4a9   :  { %482 = vst.msk [vmem:[#allocation3 + $0x8] sm:$0xff] %vm61_vm2, %v479_v60  ;;  %vm400_vm2 = vcmask 261312   ;;  %v883_v60 = vld [vmem:[%s1956_s1 + $0x80] sm:$0xff] }
 0x4aa   :  { %907 = vmatpush.msrb.mxu2 %v883_v60  ;;  %v1402_v60 = vld [vmem:[%s1957_s2 + $0x6] ss:$0 sm:$0xff] }
 0x4b0   :  { %v649_v13 = vpop.f32.mrf.mxu0 }
 0x4b1   :  { %653 = vrot.lane.b32.xlu1 %v649_v13, %s1494_s10 }
 0x4bc   :  { %v562_v14 = vpop.f32.mrf.mxu1 }
 0x4bd   :  { %566 = vrot.lane.b32.xlu0 %v562_v14, %s1493_s9  ;;  %v882_v14 = vld [vmem:[%s1956_s1 + $0x78] sm:$0xff] }
 0x4be   :  { %908 = vmatpush.msrb.mxu2 %v882_v14 }
 0x4c4   :  { %v736_v15 = vpop.f32.mrf.mxu1 }
 0x4c5   :  { %740 = vrot.lane.b32.xlu2 %v736_v15, %s1495_s11 }
 0x501   :  { %v398_v18 = vpop.permute.xlu2 %397 }
 0x502   :  { %401 = vst.msk [vmem:[#allocation3] sm:$0xff] %vm400_vm2, %v398_v18 }
 0x509   :  { %v744_v19 = vld [vmem:[#allocation3] sm:$0xff] }
 0x50a   :  { %1353 = vmatmul.msk.f32.vlgmr.msrb.gmra.mxu3 %vm23_vm0, %v744_v19 }
 0x51f   :  { %v741_v22 = vpop.permute.xlu2 %740 }
 0x523   :  { %v654_v21 = vpop.permute.xlu1 %653 }
 0x52f   :  { %v567_v20 = vpop.permute.xlu0 %566 }
 0x530   :  { %569 = vst.msk [vmem:[#allocation3 + $0x8] sm:$0xff] %vm224_vm1, %v567_v20  ;;  %vm889_vm1 = vcmask 523264  }
 0x531   :  { %656 = vst.msk [vmem:[#allocation3 + $0x8] sm:$0xff] %vm312_vm8, %v654_v21 }
 0x532   :  { %743 = vst.msk [vmem:[#allocation3 + $0x8] sm:$0xff] %vm400_vm2, %v741_v22 }
 0x539   :  { %v745_v23 = vld [vmem:[#allocation3 + $0x8] sm:$0xff] }
 0x53a   :  { %1354 = vmatmul.msk.f32.gmra.mxu3 %vm23_vm0, %v745_v23  ;;  %v881_v23 = vld [vmem:[%s1956_s1 + $0x70] sm:$0xff] }
 0x53b   :  { %909 = vmatpush.msrb.mxu2 %v881_v23  ;;  %v1009_v23 = vld [vmem:[%s1956_s1 + $0xb8] sm:$0xff] }
 0x58d   :  { %v775_v27 = vpop.f32.mrf.mxu3 }
 0x58e   :  { %v776_v28 = vadd.f32 %v1397_v26, %v775_v27  ;;  %v879_v27 = vld [vmem:[%s1956_s1 + $0x60] sm:$0xff] }
 0x590   :  { %v781_v29 = vadd.f32 %v776_v28, %v1537_v4  ;;  %v1400_v28 = vld [vmem:[%s1957_s2 + $0x4] ss:$0 sm:$0xff] }
 0x592   :  { %v785_v30 = vsel %vm23_vm0, %v781_v29, 0.0 }
 0x593   :  { %786 = vadd.xlane.f32.xlu0 %v785_v30 }
 0x5bd   :  { %v778_v31 = vpop.f32.mrf.mxu3 }
 0x5be   :  { %v779_v32 = vadd.f32 %v1397_v26, %v778_v31  ;;  %v880_v26 = vld [vmem:[%s1956_s1 + $0x68] sm:$0xff] }
 0x5bf   :  { %910 = vmatpush.msrb.mxu2 %v880_v26  ;;  %v1008_v26 = vld [vmem:[%s1956_s1 + $0xb0] sm:$0xff] }
 0x5c0   :  { %v782_v33 = vadd.f32 %v779_v32, %v1559_v10 }
 0x5c1   :  { %911 = vmatpush.msrb.mxu2 %v879_v27  ;;  %v1007_v27 = vld [vmem:[%s1956_s1 + $0xa8] sm:$0xff] }
 0x5c2   :  { %v788_v34 = vsel %vm23_vm0, %v782_v33, 0.0 }
 0x5c3   :  { %789 = vadd.xlane.f32.xlu1 %v788_v34 }
 0x606   :  { %v787_v4 = vpop.xlane.xlu0 %786 }
 0x607   :  { %v798_v41 = vmul.f32 %v1717_v40, %v787_v4 }
 0x609   :  { %v800_v42 = vsub.f32 %v781_v29, %v798_v41 }
 0x60b   :  { %v802_v43 = vmul.f32 %v800_v42, %v800_v42 }
 0x60d   :  { %v804_v10 = vsel %vm23_vm0, %v802_v43, 0.0 }
 0x60e   :  { %805 = vadd.xlane.f32.xlu2 %v804_v10 }
 0x636   :  { %v790_v44 = vpop.xlane.xlu1 %789 }
 0x637   :  { %v799_v45 = vmul.f32 %v1717_v40, %v790_v44 }
 0x639   :  { %v801_v46 = vsub.f32 %v782_v33, %v799_v45 }
 0x63b   :  { %v803_v47 = vmul.f32 %v801_v46, %v801_v46 }
 0x63d   :  { %v807_v48 = vsel %vm23_vm0, %v803_v47, 0.0 }
 0x63e   :  { %808 = vadd.xlane.f32.xlu0 %v807_v48 }
 0x681   :  { %v806_v53 = vpop.xlane.xlu2 %805 }
 0x682   :  { %v810_v54 = vmul.f32 %v806_v53, %v1717_v40 }
 0x684   :  { %v812_v55 = vadd.f32 1e-05, %v810_v54 }
 0x686   :  { %1448 = vrsqrt.f32 %v812_v55  ;;  %vm820_vm11 = vweird.f32 %v812_v55 }
 0x68c   :  { %v1449_v8 = vpop.eup %1448 }
 0x68d   :  { %v815_v56 = vmul.f32 %v1449_v8, %v812_v55  ;;  %vm821_vm10 = vweird.f32 %v1449_v8 }
 0x68e   :  { %vm822_vm12 = vmor %vm820_vm11, %vm821_vm10  ;;  %vm1140_vm10 = vcmask 1040384   ;;  %vm1174_vm11 = vcmask 1043456  }
 0x68f   :  { %v816_v57 = vmul.f32 %v1449_v8, %v815_v56 }
 0x691   :  { %v817_v58 = vmul.f32 0.5, %v816_v57 }
 0x693   :  { %v818_v59 = vsub.f32 1.5, %v817_v58 }
 0x695   :  { %v819_v61 = vmul.f32 %v1449_v8, %v818_v59 }
 0x697   :  { %v823_v63 = vsel %vm822_vm12, %v1449_v8, %v819_v61  ;;  %vm1136_vm12 = vcmask 269312  }
 0x698   :  { %v834_v0 = vmul.f32 %v823_v63, %v800_v42  ;;  %v973_v63 = vlaneseq }
 0x69a   :  { %v837_v3 = vmul.f32 %v1398_v62, %v834_v0  ;;  %v976_v6 = vshrl.u32 %v973_v63, 7 }
 0x69c   :  { %v840_v5 = vadd.f32 %v1399_v2, %v837_v3 }
 0x69e   :  { %1355 = vmatmul.msk.f32.vlgmr.msra.gmra.mxu0 %vm23_vm0, %v840_v5 }
 0x6b1   :  { %v809_v11 = vpop.xlane.xlu0 %808 }
 0x6b2   :  { %v811_v12 = vmul.f32 %v809_v11, %v1717_v40 }
 0x6b4   :  { %v813_v13 = vadd.f32 1e-05, %v811_v12  ;;  %v977_v12 = vmul.u32 8, %v976_v6  ;;  %v1164_v6 = vld [vmem:[%s1956_s1 + $0x150] sm:$0xff] }
 0x6b6   :  { %1450 = vrsqrt.f32 %v813_v13  ;;  %vm830_vm14 = vweird.f32 %v813_v13 }
 0x6bc   :  { %v1451_v15 = vpop.eup %1450 }
 0x6bd   :  { %v825_v1 = vmul.f32 %v1451_v15, %v813_v13  ;;  %vm831_vm13 = vweird.f32 %v1451_v15 }
 0x6be   :  { %vm832_vm15 = vmor %vm830_vm14, %vm831_vm13  ;;  %vm1170_vm13 = vcmask 162816   ;;  %vm1239_vm14 = vcmask 1044480  }
 0x6bf   :  { %v826_v16 = vmul.f32 %v1451_v15, %v825_v1  ;;  %v978_v1 = vadd.s32 7, %v977_v12  ;;  %v1232_v12 = vld [vmem:[%s1956_s1 + $0x1b8] sm:$0x1f] }
 0x6c1   :  { %v827_v24 = vmul.f32 0.5, %v826_v16 }
 0x6c3   :  { %v828_v17 = vsub.f32 1.5, %v827_v24 }
 0x6c5   :  { %v829_v18 = vmul.f32 %v1451_v15, %v828_v17  ;;  %v1403_v17 = vld [vmem:[%s1957_s2 + $0x7] ss:$0 sm:$0xff] }
 0x6c7   :  { %v833_v19 = vsel %vm832_vm15, %v1451_v15, %v829_v18  ;;  %v974_v15 = vand.u32 127, %v973_v63  ;;  %vm1303_vm15 = vcmask 164872  }
 0x6c8   :  { %v835_v20 = vmul.f32 %v833_v19, %v801_v46 }
 0x6c9   :  { %vm979_vm2 = vcmp.eq.s32.totalorder %v974_v15, %v978_v1  ;;  %v1227_v15 = vld [vmem:[%s1956_s1 + $0x190] sm:$0xff]  ;;  %v1226_v1 = vld [vmem:[%s1956_s1 + $0x188] sm:$0xff] }
 0x6ca   :  { %v838_v21 = vmul.f32 %v1398_v62, %v835_v20 }
 0x6cc   :  { %v841_v22 = vadd.f32 %v1399_v2, %v838_v21  ;;  %v1497_v21 = vmov 0.0  }
 0x6ce   :  { %1356 = vmatmul.msk.f32.gmra.mxu0 %vm23_vm0, %v841_v22 }
 0x71b   :  { %v871_v29 = vpop.f32.mrf.mxu0 }
 0x71c   :  { %v872_v30 = vadd.f32 %v1400_v28, %v871_v29  ;;  %v1038_v29 = vld [vmem:[%s1956_s1 + $0xd8] sm:$0xff] }
 0x71d   :  { %1056 = vmatpush.msra.mxu3 %v1038_v29 }
 0x71e   :  { %v877_v31 = vmax.f32 %v872_v30, 0.0  ;;  %v1037_v30 = vld [vmem:[%s1956_s1 + $0xd0] sm:$0xff] }
 0x71f   :  { %1057 = vmatpush.msra.mxu3 %v1037_v30 }
 0x720   :  { %1357 = vmatmul.msk.f32.vlgmr.msrb.gmra.mxu2 %vm889_vm1, %v877_v31 }
 0x74b   :  { %v874_v32 = vpop.f32.mrf.mxu0 }
 0x74c   :  { %v875_v33 = vadd.f32 %v1400_v28, %v874_v32  ;;  %v1006_v28 = vld [vmem:[%s1956_s1 + $0xa0] sm:$0xff] }
 0x74d   :  { %v1104_v32 = vld [vmem:[%s1956_s1 + $0x119] sm:$0xff] }
 0x74e   :  { %v878_v34 = vmax.f32 %v875_v33, 0.0  ;;  %v1201_v33 = vld [vmem:[%s1956_s1 + $0x17d] sm:$0xff] }
 0x74f   :  { %1214 = vmatpush.msra.mxu2 %v1201_v33  ;;  %v1412_v33 = vld [vmem:[%s1957_s2 + $0xe] ss:$0 sm:$0xff] }
 0x750   :  { %1358 = vmatmul.msk.f32.gmra.mxu2 %vm889_vm1, %v878_v34  ;;  %v1103_v34 = vld [vmem:[%s1956_s1 + $0x111] sm:$0xff]  ;;  %vm1235_vm1 = vcmask 433152  }
 0x7a3   :  { %v913_v25 = vpop.f32.mrf.mxu2 }
 0x7a4   :  { %v914_v36 = vadd.f32 %v1401_v35, %v913_v25  ;;  %v1036_v25 = vld [vmem:[%s1956_s1 + $0xc8] sm:$0xff] }
 0x7a5   :  { %1058 = vmatpush.msra.mxu3 %v1036_v25  ;;  %v1413_v25 = vld [vmem:[%s1957_s2 + $0xf] ss:$0 sm:$0xff] }
 0x7a6   :  { %v919_v37 = vadd.f32 %v914_v36, %v840_v5  ;;  %v1035_v36 = vld [vmem:[%s1956_s1 + $0xc0] sm:$0xff] }
 0x7a7   :  { %1059 = vmatpush.msra.mxu3 %v1035_v36 }
 0x7a8   :  { %v923_v38 = vsel %vm23_vm0, %v919_v37, 0.0 }
 0x7a9   :  { %924 = vadd.xlane.f32.xlu2 %v923_v38  ;;  %v1199_v38 = vld [vmem:[%s1956_s1 + $0x16d] sm:$0xff] }
 0x7d3   :  { %v916_v39 = vpop.f32.mrf.mxu2 }
 0x7d4   :  { %v917_v4 = vadd.f32 %v1401_v35, %v916_v39  ;;  %v1200_v35 = vld [vmem:[%s1956_s1 + $0x175] sm:$0xff]  ;;  %v1101_v39 = vld [vmem:[%s1956_s1 + $0x101] sm:$0xff] }
 0x7d5   :  { %1215 = vmatpush.msra.mxu2 %v1200_v35 }
 0x7d6   :  { %v920_v41 = vadd.f32 %v917_v4, %v841_v22  ;;  %v1359_v22 = vsel %vm979_vm2, 1.0, %v1497_v21  ;;  %v1198_v4 = vld [vmem:[%s1956_s1 + $0x165] sm:$0xff]  ;;  %v1409_v21 = vld [vmem:[%s1956_s1 + $0x164] ss:$0 sm:$0xff] }
 0x7d7   :  { %1216 = vmatpush.msra.mxu2 %v1199_v38 }
 0x7d8   :  { %v926_v42 = vsel %vm23_vm0, %v920_v41, 0.0 }
 0x7d9   :  { %927 = vadd.xlane.f32.xlu1 %v926_v42  ;;  %v1066_v42 = vld [vmem:[%s1956_s1 + $0xf0] sm:$0xff]  ;;  %1217 = vmatpush.msra.mxu2 %v1198_v4 }
 0x81c   :  { %v925_v43 = vpop.xlane.xlu2 %924 }
 0x81d   :  { %v929_v10 = vmul.f32 %v925_v43, %v1717_v40  ;;  %v1404_v43 = vld [vmem:[%s1957_s2 + $0x8] ss:$0 sm:$0xff] }
 0x81f   :  { %v931_v44 = vsub.f32 %v919_v37, %v929_v10  ;;  %v1102_v37 = vld [vmem:[%s1956_s1 + $0x109] sm:$0xff] }
 0x821   :  { %v933_v45 = vmul.f32 %v931_v44, %v931_v44 }
 0x823   :  { %v935_v46 = vsel %vm23_vm0, %v933_v45, 0.0  ;;  %v1065_v45 = vld [vmem:[%s1956_s1 + $0xe8] sm:$0xff] }
 0x824   :  { %936 = vadd.xlane.f32.xlu1 %v935_v46  ;;  %v1064_v46 = vld [vmem:[%s1956_s1 + $0xe0] sm:$0xff] }
 0x84c   :  { %v928_v47 = vpop.xlane.xlu1 %927 }
 0x84d   :  { %v930_v48 = vmul.f32 %v928_v47, %v1717_v40  ;;  %v1405_v47 = vld [vmem:[%s1957_s2 + $0x9] ss:$0 sm:$0xff] }
 0x84f   :  { %v932_v49 = vsub.f32 %v920_v41, %v930_v48  ;;  %v1067_v41 = vld [vmem:[%s1956_s1 + $0xf8] sm:$0xff] }
 0x850   :  { %1085 = vmatpush.msrb.mxu0 %v1067_v41 }
 0x851   :  { %v934_v50 = vmul.f32 %v932_v49, %v932_v49 }
 0x852   :  { %1086 = vmatpush.msrb.mxu0 %v1066_v42 }
 0x853   :  { %v938_v51 = vsel %vm23_vm0, %v934_v50, 0.0  ;;  %v1133_v50 = vld [vmem:[%s1956_s1 + $0x148] sm:$0x1] }
 0x854   :  { %939 = vadd.xlane.f32.xlu0 %v938_v51  ;;  %1087 = vmatpush.msrb.mxu0 %v1065_v45  ;;  %v1132_v51 = vld [vmem:[%s1956_s1 + $0x140] sm:$0xff] }
 0x855   :  { %1365 = vmatpush.msk.msrb.mxu3 %vm1140_vm10, %v1133_v50 }
 0x856   :  { %1088 = vmatpush.msrb.mxu0 %v1064_v46 }
 0x857   :  { %1156 = vmatpush.msrb.mxu3 %v1132_v51 }
 0x897   :  { %v937_v52 = vpop.xlane.xlu1 %936 }
 0x898   :  { %v941_v53 = vmul.f32 %v937_v52, %v1717_v40  ;;  %v1498_v52 = vmov 0  }
 0x899   :  { %1394 = vset.pattern.permute.xlu2 %v1498_v52  ;;  %1395 = vset.pattern.permute.xlu0 %v1498_v52 }
 0x89a   :  { %v943_v54 = vadd.f32 1e-05, %v941_v53  ;;  %v1406_v53 = vld [vmem:[%s1957_s2 + $0xa] ss:$0 sm:$0xff] }
 0x89c   :  { %1452 = vrsqrt.f32 %v943_v54  ;;  %vm951_vm4 = vweird.f32 %v943_v54 }
 0x8a2   :  { %v1453_v55 = vpop.eup %1452 }
 0x8a3   :  { %v946_v8 = vmul.f32 %v1453_v55, %v943_v54  ;;  %vm952_vm3 = vweird.f32 %v1453_v55 }
 0x8a4   :  { %vm953_vm5 = vmor %vm951_vm4, %vm952_vm3  ;;  %vm1309_vm3 = vcmask 205992  }
 0x8a5   :  { %v947_v58 = vmul.f32 %v1453_v55, %v946_v8  ;;  %v1131_v8 = vld [vmem:[%s1956_s1 + $0x138] sm:$0xff] }
 0x8a6   :  { %1157 = vmatpush.msrb.mxu3 %v1131_v8 }
 0x8a7   :  { %v948_v61 = vmul.f32 0.5, %v947_v58  ;;  %v1166_v58 = vld [vmem:[%s1956_s1 + $0x160] sm:$0xf] }
 0x8a8   :  { %1367 = vmatpush.msk.msra.mxu0 %vm1174_vm11, %v1166_v58 }
 0x8a9   :  { %v949_v62 = vsub.f32 1.5, %v948_v61 }
 0x8ab   :  { %v950_v3 = vmul.f32 %v1453_v55, %v949_v62  ;;  %v1408_v62 = vld [vmem:[%s1957_s2 + $0xb] ss:$0 sm:$0xff] }
 0x8ad   :  { %v954_v9 = vsel %vm953_vm5, %v1453_v55, %v950_v3 }
 0x8ae   :  { %v965_v13 = vmul.f32 %v954_v9, %v931_v44 }
 0x8b0   :  { %v968_v18 = vmul.f32 %v1402_v60, %v965_v13  ;;  %v1229_v13 = vld [vmem:[%s1956_s1 + $0x1a0] sm:$0xff] }
 0x8b2   :  { %v971_v20 = vadd.f32 %v1403_v17, %v968_v18  ;;  %v1266_v18 = vld [vmem:[%s1956_s1 + $0x1d8] sm:$0xff] }
 0x8c7   :  { %v940_v56 = vpop.xlane.xlu0 %939 }
 0x8c8   :  { %v942_v57 = vmul.f32 %v940_v56, %v1717_v40  ;;  %v1130_v56 = vld [vmem:[%s1956_s1 + $0x130] sm:$0xff] }
 0x8c9   :  { %1158 = vmatpush.msrb.mxu3 %v1130_v56 }
 0x8ca   :  { %v944_v59 = vadd.f32 1e-05, %v942_v57  ;;  %v1129_v57 = vld [vmem:[%s1956_s1 + $0x128] sm:$0xff] }
 0x8cb   :  { %1159 = vmatpush.msrb.mxu3 %v1129_v57 }
 0x8cc   :  { %1454 = vrsqrt.f32 %v944_v59  ;;  %vm961_vm7 = vweird.f32 %v944_v59 }
 0x8d2   :  { %v1455_v0 = vpop.eup %1454 }
 0x8d3   :  { %v956_v2 = vmul.f32 %v1455_v0, %v944_v59  ;;  %vm962_vm6 = vweird.f32 %v1455_v0  ;;  %v1407_v59 = vld [vmem:[%s1956_s1 + $0x100] ss:$0 sm:$0xff] }
 0x8d4   :  { %vm963_vm8 = vmor %vm961_vm7, %vm962_vm6 }
 0x8d5   :  { %v957_v5 = vmul.f32 %v1455_v0, %v956_v2 }
 0x8d7   :  { %v958_v7 = vmul.f32 0.5, %v957_v5  ;;  %v1165_v5 = vld [vmem:[%s1956_s1 + $0x158] sm:$0xff] }
 0x8d8   :  { %1192 = vmatpush.msra.mxu0 %v1165_v5 }
 0x8d9   :  { %v959_v11 = vsub.f32 1.5, %v958_v7  ;;  %v1410_v7 = vld [vmem:[%s1957_s2 + $0xc] ss:$0 sm:$0xff] }
 0x8da   :  { %1193 = vmatpush.msra.mxu0 %v1164_v6 }
 0x8db   :  { %v960_v40 = vmul.f32 %v1455_v0, %v959_v11 }
 0x8dd   :  { %v964_v14 = vsel %vm963_vm8, %v1455_v0, %v960_v40  ;;  %v1231_v40 = vld [vmem:[%s1956_s1 + $0x1b0] sm:$0xff] }
 0x8de   :  { %v966_v16 = vmul.f32 %v964_v14, %v932_v49  ;;  %v1228_v14 = vld [vmem:[%s1956_s1 + $0x198] sm:$0xff] }
 0x8e0   :  { %v969_v24 = vmul.f32 %v1402_v60, %v966_v16  ;;  %v1230_v60 = vld [vmem:[%s1956_s1 + $0x1a8] sm:$0xff]  ;;  %v1269_v16 = vld [vmem:[%s1956_s1 + $0x1f0] sm:$0x1f] }
 0x8e2   :  { %v972_v19 = vadd.f32 %v1403_v17, %v969_v24  ;;  %v1268_v24 = vld [vmem:[%s1956_s1 + $0x1e8] sm:$0xff]  ;;  %v1267_v17 = vld [vmem:[%s1956_s1 + $0x1e0] sm:$0xff] }
 0x8e4   :  { %1000 = vmatpush.msrb.mxu1 %v972_v19  ;;  %v1265_v19 = vld [vmem:[%s1956_s1 + $0x1d0] sm:$0xff] }
 0x8e6   :  { %1001 = vmatpush.msrb.mxu1 %v971_v20 }
 0x8e7   :  { %1360 = vmatmul.msk.f32.vlgmr.msrb.gmra.mxu1 %vm982_vm9, %v1359_v22 }
 0x8e8   :  { %1027 = vmatpush.msra.mxu1 %v1009_v23 }
 0x8ea   :  { %1028 = vmatpush.msra.mxu1 %v1008_v26 }
 0x8ec   :  { %1029 = vmatpush.msra.mxu1 %v1007_v27  ;;  %v1411_v27 = vld [vmem:[%s1957_s2 + $0xd] ss:$0 sm:$0xff] }
 0x8ee   :  { %1030 = vmatpush.msra.mxu1 %v1006_v28 }
 0x8f0   :  { %1117 = vmatpush.msrb.mxu1 %v1104_v32  ;;  %v1263_v32 = vld [vmem:[%s1956_s1 + $0x1c0] sm:$0xff] }
 0x8f2   :  { %1118 = vmatpush.msrb.mxu1 %v1103_v34 }
 0x8f4   :  { %1119 = vmatpush.msrb.mxu1 %v1102_v37 }
 0x8f6   :  { %1120 = vmatpush.msrb.mxu1 %v1101_v39 }
 0x964   :  { %v1003_v31 = vpop.f32.mrf.mxu1 }
 0x965   :  { %1361 = vmatmul.msk.f32.vlgmr.msra.gmra.mxu1 %vm23_vm0, %v1003_v31  ;;  %v1264_v31 = vld [vmem:[%s1956_s1 + $0x1c8] sm:$0xff] }
 0x966   :  { %1370 = vmatpush.msk.msra.mxu1 %vm1239_vm14, %v1232_v12 }
 0x968   :  { %1253 = vmatpush.msra.mxu1 %v1231_v40 }
 0x96a   :  { %1254 = vmatpush.msra.mxu1 %v1230_v60 }
 0x96c   :  { %1255 = vmatpush.msra.mxu1 %v1229_v13 }
 0x96e   :  { %1256 = vmatpush.msra.mxu1 %v1228_v14 }
 0x970   :  { %1257 = vmatpush.msra.mxu1 %v1227_v15 }
 0x972   :  { %1258 = vmatpush.msra.mxu1 %v1226_v1 }
 0x9e2   :  { %v1032_v10 = vpop.f32.mrf.mxu1 }
 0x9e3   :  { %v1033_v44 = vadd.f32 %v1404_v43, %v1032_v10 }
 0x9e5   :  { %1362 = vmatmul.msk.f32.vlgmr.msra.gmra.mxu3 %vm23_vm0, %v1033_v44  ;;  %1364 = vmatmul.msk.f32.vlgmr.msrb.gmra.mxu1 %vm23_vm0, %v1033_v44 }
 0x9e6   :  { %1369 = vmatmul.msk.f32.vlgmr.msra.gmra.mxu2 %vm23_vm0, %v1033_v44  ;;  %1372 = vmatpush.msk.msra.mxu3 %vm1239_vm14, %v1269_v16 }
 0x9e8   :  { %1288 = vmatpush.msra.mxu3 %v1268_v24 }
 0x9ea   :  { %1289 = vmatpush.msra.mxu3 %v1267_v17 }
 0x9ec   :  { %1290 = vmatpush.msra.mxu3 %v1266_v18 }
 0x9ee   :  { %1291 = vmatpush.msra.mxu3 %v1265_v19 }
 0x9f0   :  { %1292 = vmatpush.msra.mxu3 %v1264_v31 }
 0x9f2   :  { %1293 = vmatpush.msra.mxu3 %v1263_v32 }
 0xa62   :  { %v1122_v0 = vpop.f32.mrf.mxu1 }
 0xa68   :  { %v1061_v48 = vpop.f32.mrf.mxu3 }
 0xa69   :  { %v1062_v49 = vadd.f32 %v1405_v47, %v1061_v48  ;;  %v1219_v28 = vpop.f32.mrf.mxu2 }
 0xa6b   :  { %1363 = vmatmul.msk.f32.vlgmr.msrb.gmra.mxu0 %vm23_vm0, %v1062_v49  ;;  %vm1298_vm0 = vcmask 1024  }
 0xae8   :  { %v1090_v54 = vpop.f32.mrf.mxu0 }
 0xae9   :  { %v1091_v55 = vadd.f32 %v1406_v53, %v1090_v54 }
 0xaeb   :  { %1299 = vst.msk [vmem:[#allocation4] sm:$0x3] %vm1298_vm0, %v1091_v55  ;;  %1096 = vperm.xlu2 %1394, %v1091_v55  }
 0xb45   :  { %v1097_v61 = vpop.permute.xlu2 %1096 }
 0xb46   :  { %v1100_v63 = vmul.f32 %v1407_v59, %v1097_v61  ;;  %v1169_v22 = vmul.f32 %v1409_v21, %v1097_v61 }
 0xb48   :  { %v1125_v2 = vadd.f32 %v1122_v0, %v1100_v63 }
 0xb4a   :  { %v1128_v3 = vadd.f32 %v1408_v62, %v1125_v2 }
 0xb4c   :  { %1366 = vmatmul.msk.f32.vlgmr.msrb.gmra.mxu3 %vm1136_vm12, %v1128_v3 }
 0xbcf   :  { %v1161_v9 = vpop.f32.mrf.mxu3 }
 0xbd0   :  { %v1162_v11 = vadd.f32 %v1410_v7, %v1161_v9 }
 0xbd2   :  { %1300 = vrot.lane.b32.xlu0 %v1162_v11, %s1499_s14  ;;  %1368 = vmatmul.msk.f32.vlgmr.msra.gmra.mxu0 %vm1170_vm13, %v1162_v11 }
 0xc44   :  { %v1301_v20 = vpop.permute.xlu0 %1300 }
 0xc45   :  { %1304 = vst.msk [vmem:[#allocation4] sm:$0x3] %vm1303_vm15, %v1301_v20 }
 0xc4f   :  { %v1195_v23 = vpop.f32.mrf.mxu0 }
 0xc50   :  { %v1196_v26 = vadd.f32 %v1195_v23, %v1169_v22 }
 0xc52   :  { %v1222_v29 = vadd.f32 %v1219_v28, %v1196_v26 }
 0xc54   :  { %v1225_v30 = vadd.f32 %v1411_v27, %v1222_v29 }
 0xc56   :  { %1371 = vmatmul.msk.f32.vlgmr.msra.gmra.mxu1 %vm1235_vm1, %v1225_v30 }
 0xcd3   :  { %v1260_v34 = vpop.f32.mrf.mxu1 }
 0xcd4   :  { %v1261_v35 = vadd.f32 %v1412_v33, %v1260_v34 }
 0xcd6   :  { %1373 = vmatmul.msk.f32.vlgmr.msra.gmra.mxu3 %vm1235_vm1, %v1261_v35 }
 0xd59   :  { %v1295_v36 = vpop.f32.mrf.mxu3 }
 0xd5a   :  { %v1296_v37 = vadd.f32 %v1413_v25, %v1295_v36 }
 0xd5c   :  { %1306 = vrot.lane.b32.xlu1 %v1296_v37, %s1500_s23 }
 0xdce   :  { %v1307_v38 = vpop.permute.xlu1 %1306 }
 0xdcf   :  { %1310 = vst.msk [vmem:[#allocation4] sm:$0x3] %vm1309_vm3, %v1307_v38 }
 0xdd0   :  { %1321 = dma.vmem_to_hbm [thread:$0]  %s1317_s25, 32, %s1319_s27, [#allocation5]  }
 0xdd1   :  { %1480 = dma.done.wait [#allocation5], 32  }
 0xdd2   :  { %1481 = vsyncadd [#allocation5], 4294967264 }
 0xdd3   :  { %1326 = vsyncpa [#allocation5], 1 }

</bundles_post_ra>
